<compile_context>
chip_gen: v7x
topology: tpu7x:2x2x1
jax: 0.10.0
libtpu: 0.0.40
codegen_flags: <defaults>
</compile_context>

<pallas_src>
import jax
import jax.numpy as jnp
from jax.experimental import pallas as pl
from jax.experimental.pallas import tpu as pltpu


def _round_up(x, m):
    return ((x + m - 1) // m) * m


def mlp_ts_kernel(x_ref, w1_ref, b1_ref, w2_ref, b2_ref, o_ref):
    """Fused fc1 -> ReLU -> fc2 for one (tm, input_dim) row tile."""
    # Operands arrive in native f32; cast to bf16 on the VPU (hidden under the
    # input DMA), run the MXU in bf16 with f32 accumulation.
    x = x_ref[...].astype(jnp.bfloat16)
    w1 = w1_ref[...].astype(jnp.bfloat16)
    h = jnp.dot(x, w1, preferred_element_type=jnp.float32)      # MXU, f32 acc
    h = jnp.maximum(h + b1_ref[...], 0.0)                       # bias + ReLU (f32, VPU)
    w2 = w2_ref[...].astype(jnp.bfloat16)
    y = jnp.dot(h.astype(jnp.bfloat16), w2, preferred_element_type=jnp.float32)
    o_ref[...] = (y + b2_ref[...]).astype(o_ref.dtype)


def _num_tensorcores():
    # v7x packs 2 TensorCores per chip; v5e/v6e have 1.  Default to 1.
    try:
        kind = jax.devices()[0].device_kind.lower()
    except Exception:
        return 1
    return 2 if ("v7" in kind or "7x" in kind) else 1


def _pick_tiling(batch, n_cores):
    # 1-TC chips: one big streaming tile (<=512 rows); grid of 1 is fine.
    # v7x: force >= 2 grid steps so both cores stream, tiles balanced so any
    # padding is < 8 rows per tile.
    cap = 512 if n_cores == 1 else 256
    n_tiles = max(1, -(-batch // cap))
    if n_cores > 1 and batch > 8:
        n_tiles = max(n_tiles, n_cores)
    tm = _round_up(-(-batch // n_tiles), 8)
    return tm, n_tiles


def mlp_ts_forward(x, w1, b1, w2, b2, *, tm=None, out_dtype=None):
    """relu(x @ w1 + b1) @ w2 + b2.

    x: (B, input_dim) f32.  Weights are (in, out), i.e. transposed vs.
    PyTorch's nn.Linear (out, in) storage.  Matmuls run bf16 on the MXU with
    f32 accumulation; set out_dtype=jnp.bfloat16 if downstream accepts it.
    """
    B, input_dim = x.shape
    hidden_dim = w1.shape[1]
    output_dim = w2.shape[1]
    out_dtype = x.dtype if out_dtype is None else out_dtype

    if tm is None:
        tm, n_tiles = _pick_tiling(B, _num_tensorcores())
    else:
        assert tm % 8 == 0, "batch tile must be a multiple of the 8-row sublane"
        n_tiles = pl.cdiv(B, tm)
    b_pad = n_tiles * tm

    # Ragged batches: pad by < 8 rows per tile.  No dtype cast here — x goes
    # to the kernel in its native dtype.  Padded rows compute relu(b1)@W2+b2
    # garbage and are sliced off below; keep the final [:B] slice.
    x_p = x if b_pad == B else jnp.pad(x, ((0, b_pad - B), (0, 0)))

    b1_2d = b1.reshape(1, hidden_dim).astype(jnp.float32)
    b2_2d = b2.reshape(1, output_dim).astype(jnp.float32)

    cost = pl.CostEstimate(
        flops=2 * b_pad * (input_dim * hidden_dim + hidden_dim * output_dim),
        transcendentals=0,
        bytes_accessed=(b_pad * input_dim * x.dtype.itemsize
                        + w1.size * w1.dtype.itemsize
                        + w2.size * w2.dtype.itemsize
                        + b1_2d.size * 4 + b2_2d.size * 4
                        + b_pad * output_dim * jnp.dtype(out_dtype).itemsize),
    )

    def build(single_buffer_weights):
        # W1/b1/W2/b2 have grid-invariant index_maps (fetched once); single-
        # buffer them to reclaim VMEM headroom for larger batch tiles.
        pm = dict(pipeline_mode=pl.Buffered(1)) if single_buffer_weights else {}
        grid_spec = pltpu.PrefetchScalarGridSpec(
            num_scalar_prefetch=0,
            grid=(n_tiles,),
            in_specs=[
                pl.BlockSpec((tm, input_dim), lambda i: (i, 0)),                 # x tile
                pl.BlockSpec((input_dim, hidden_dim), lambda i: (0, 0), **pm),   # W1
                pl.BlockSpec((1, hidden_dim), lambda i: (0, 0), **pm),           # b1
                pl.BlockSpec((hidden_dim, output_dim), lambda i: (0, 0), **pm),  # W2
                pl.BlockSpec((1, output_dim), lambda i: (0, 0), **pm),           # b2
            ],
            out_specs=pl.BlockSpec((tm, output_dim), lambda i: (i, 0)),
        )
        return pl.pallas_call(
            mlp_ts_kernel,
            out_shape=jax.ShapeDtypeStruct((b_pad, output_dim), out_dtype),
            grid_spec=grid_spec,
            compiler_params=pltpu.CompilerParams(
                dimension_semantics=("parallel",)),
            cost_estimate=cost,
        )

    try:
        out = build(True)(x_p, w1, b1_2d, w2, b2_2d)
    except Exception:
        # Fallback if this jax build rejects pl.Buffered(1): default
        # double-buffering (costs ~0.4 MiB VMEM, still far under limits).
        out = build(False)(x_p, w1, b1_2d, w2, b2_2d)

    return out if b_pad == B else out[:B]


if __name__ == "__main__":
    # MLP_ts defaults: input_dim=512, hidden_dim=256, output_dim=256.
    input_dim, hidden_dim, output_dim = 512, 256, 256

    key = jax.random.PRNGKey(0)
    kx, kx2, kw1, kb1, kw2, kb2 = jax.random.split(key, 6)

    # PyTorch nn.Linear default init: U(-1/sqrt(fan_in), 1/sqrt(fan_in)).
    lim1 = 1.0 / (input_dim ** 0.5)
    lim2 = 1.0 / (hidden_dim ** 0.5)
    w1 = jax.random.uniform(kw1, (input_dim, hidden_dim), jnp.float32, -lim1, lim1)
    b1 = jax.random.uniform(kb1, (hidden_dim,), jnp.float32, -lim1, lim1)
    w2 = jax.random.uniform(kw2, (hidden_dim, output_dim), jnp.float32, -lim2, lim2)
    b2 = jax.random.uniform(kb2, (output_dim,), jnp.float32, -lim2, lim2)

    def ref_fwd(xx):
        return jnp.maximum(xx @ w1 + b1, 0.0) @ w2 + b2

    # Case 1: small even batch (grid=1 on v5e/v6e, 2 balanced tiles on v7x).
    x = jax.random.normal(kx, (64, input_dim), jnp.float32)
    out = jax.block_until_ready(mlp_ts_forward(x, w1, b1, w2, b2))
    assert out.shape == (64, output_dim) and out.dtype == jnp.float32
    # bf16 MXU operands => loosened tolerance vs. the f32 reference.
    assert jnp.allclose(out, ref_fwd(x), atol=3e-2, rtol=3e-2), "mismatch vs reference"

    # Case 2: ragged batch exercising the pad-and-slice path.
    x2 = jax.random.normal(kx2, (50, input_dim), jnp.float32)
    out2 = jax.block_until_ready(mlp_ts_forward(x2, w1, b1, w2, b2))
    assert out2.shape == (50, output_dim)
    assert jnp.allclose(out2, ref_fwd(x2), atol=3e-2, rtol=3e-2), "mismatch vs reference (ragged)"

    print("KERNEL_OK")
</pallas_src>

<mosaic_0001>
module attributes {stable_mosaic.version = 11 : i64} {
  func.func @mlp_ts_kernel(%arg0: i32, %arg1: memref<64x512xf32, #tpu.memory_space<vmem>>, %arg2: memref<512x256xf32, #tpu.memory_space<vmem>>, %arg3: memref<1x256xf32, #tpu.memory_space<vmem>>, %arg4: memref<256x256xf32, #tpu.memory_space<vmem>>, %arg5: memref<1x256xf32, #tpu.memory_space<vmem>>, %arg6: memref<64x256xf32, #tpu.memory_space<vmem>>) attributes {dimension_semantics = [#tpu.dimension_semantics<parallel>], iteration_bounds = array<i64: 1>, scalar_prefetch = 0 : i64, scratch_operands = 0 : i64, tpu.core_type = #tpu.core_type<tc>, window_params = [{transform_indices = @transform_0, window_bounds = array<i64: 64, 512>}, {pipeline_mode = #tpu.pipeline_mode<synchronous>, transform_indices = @transform_1, window_bounds = array<i64: 512, 256>}, {pipeline_mode = #tpu.pipeline_mode<synchronous>, transform_indices = @transform_2, window_bounds = array<i64: 1, 256>}, {pipeline_mode = #tpu.pipeline_mode<synchronous>, transform_indices = @transform_3, window_bounds = array<i64: 256, 256>}, {pipeline_mode = #tpu.pipeline_mode<synchronous>, transform_indices = @transform_4, window_bounds = array<i64: 1, 256>}, {transform_indices = @transform_5, window_bounds = array<i64: 64, 256>}]} {
    %c0 = arith.constant 0 : index
    %c0_0 = arith.constant 0 : index
    %0 = vector.load %arg1[%c0, %c0_0] : memref<64x512xf32, #tpu.memory_space<vmem>>, vector<64x512xf32>
    %1 = arith.truncf %0 : vector<64x512xf32> to vector<64x512xbf16>
    %c0_1 = arith.constant 0 : index
    %c0_2 = arith.constant 0 : index
    %2 = vector.load %arg2[%c0_1, %c0_2] : memref<512x256xf32, #tpu.memory_space<vmem>>, vector<512x256xf32>
    %3 = arith.truncf %2 : vector<512x256xf32> to vector<512x256xbf16>
    %cst = arith.constant dense<0.000000e+00> : vector<64x256xf32>
    %4 = tpu.matmul %1, %3, %cst {dimension_numbers = #tpu.dot_dimension_numbers<[1], [0], [0], [1], [0, 0, 1, 1], [], []>} : vector<64x512xbf16>, vector<512x256xbf16>, vector<64x256xf32> -> vector<64x256xf32>
    %c0_3 = arith.constant 0 : index
    %c0_4 = arith.constant 0 : index
    %5 = vector.load %arg3[%c0_3, %c0_4] : memref<1x256xf32, #tpu.memory_space<vmem>>, vector<1x256xf32>
    %6 = vector.broadcast %5 : vector<1x256xf32> to vector<64x256xf32>
    %7 = arith.addf %4, %6 : vector<64x256xf32>
    %cst_5 = arith.constant 0.000000e+00 : f32
    %8 = vector.broadcast %cst_5 : f32 to vector<64x256xf32>
    %9 = arith.maximumf %7, %8 : vector<64x256xf32>
    %c0_6 = arith.constant 0 : index
    %c0_7 = arith.constant 0 : index
    %10 = vector.load %arg4[%c0_6, %c0_7] : memref<256x256xf32, #tpu.memory_space<vmem>>, vector<256x256xf32>
    %11 = arith.truncf %10 : vector<256x256xf32> to vector<256x256xbf16>
    %12 = arith.truncf %9 : vector<64x256xf32> to vector<64x256xbf16>
    %cst_8 = arith.constant dense<0.000000e+00> : vector<64x256xf32>
    %13 = tpu.matmul %12, %11, %cst_8 {dimension_numbers = #tpu.dot_dimension_numbers<[1], [0], [0], [1], [0, 0, 1, 1], [], []>} : vector<64x256xbf16>, vector<256x256xbf16>, vector<64x256xf32> -> vector<64x256xf32>
    %c0_9 = arith.constant 0 : index
    %c0_10 = arith.constant 0 : index
    %14 = vector.load %arg5[%c0_9, %c0_10] : memref<1x256xf32, #tpu.memory_space<vmem>>, vector<1x256xf32>
    %15 = vector.broadcast %14 : vector<1x256xf32> to vector<64x256xf32>
    %16 = arith.addf %13, %15 : vector<64x256xf32>
    %c0_11 = arith.constant 0 : index
    %c0_12 = arith.constant 0 : index
    %17 = vector.load %arg6[%c0_11, %c0_12] : memref<64x256xf32, #tpu.memory_space<vmem>>, vector<64x256xf32>
    tpu.vector_store %arg6[%c0_11, %c0_12], %16 {strides = array<i32>} : memref<64x256xf32, #tpu.memory_space<vmem>>, vector<64x256xf32>,
    return
  }
  func.func @transform_0(%arg0: i32) -> (i32, i32) {
    %c0_i32 = arith.constant 0 : i32
    %c0_i32_0 = arith.constant 0 : i32
    return %arg0, %c0_i32 : i32, i32
  }
  func.func @transform_1(%arg0: i32) -> (i32, i32) {
    %c0_i32 = arith.constant 0 : i32
    %c0_i32_0 = arith.constant 0 : i32
    %c0_i32_1 = arith.constant 0 : i32
    return %c0_i32, %c0_i32_0 : i32, i32
  }
  func.func @transform_2(%arg0: i32) -> (i32, i32) {
    %c0_i32 = arith.constant 0 : i32
    %c0_i32_0 = arith.constant 0 : i32
    %c0_i32_1 = arith.constant 0 : i32
    return %c0_i32, %c0_i32_0 : i32, i32
  }
  func.func @transform_3(%arg0: i32) -> (i32, i32) {
    %c0_i32 = arith.constant 0 : i32
    %c0_i32_0 = arith.constant 0 : i32
    %c0_i32_1 = arith.constant 0 : i32
    return %c0_i32, %c0_i32_0 : i32, i32
  }
  func.func @transform_4(%arg0: i32) -> (i32, i32) {
    %c0_i32 = arith.constant 0 : i32
    %c0_i32_0 = arith.constant 0 : i32
    %c0_i32_1 = arith.constant 0 : i32
    return %c0_i32, %c0_i32_0 : i32, i32
  }
  func.func @transform_5(%arg0: i32) -> (i32, i32) {
    %c0_i32 = arith.constant 0 : i32
    %c0_i32_0 = arith.constant 0 : i32
    return %arg0, %c0_i32 : i32, i32
  }
}

module attributes {stable_mosaic.version = 11 : i64} {
  func.func @mlp_ts_kernel(%arg0: i32, %arg1: memref<64x512xf32, #tpu.memory_space<vmem>>, %arg2: memref<512x256xf32, #tpu.memory_space<vmem>>, %arg3: memref<1x256xf32, #tpu.memory_space<vmem>>, %arg4: memref<256x256xf32, #tpu.memory_space<vmem>>, %arg5: memref<1x256xf32, #tpu.memory_space<vmem>>, %arg6: memref<64x256xf32, #tpu.memory_space<vmem>>) attributes {dimension_semantics = [#tpu.dimension_semantics<parallel>], iteration_bounds = array<i64: 1>, scalar_prefetch = 0 : i64, scratch_operands = 0 : i64, tpu.core_type = #tpu.core_type<tc>, window_params = [{transform_indices = @transform_0, window_bounds = array<i64: 64, 512>}, {pipeline_mode = #tpu.pipeline_mode<synchronous>, transform_indices = @transform_1, window_bounds = array<i64: 512, 256>}, {pipeline_mode = #tpu.pipeline_mode<synchronous>, transform_indices = @transform_2, window_bounds = array<i64: 1, 256>}, {pipeline_mode = #tpu.pipeline_mode<synchronous>, transform_indices = @transform_3, window_bounds = array<i64: 256, 256>}, {pipeline_mode = #tpu.pipeline_mode<synchronous>, transform_indices = @transform_4, window_bounds = array<i64: 1, 256>}, {transform_indices = @transform_5, window_bounds = array<i64: 64, 256>}]} {
    %c0 = arith.constant 0 : index
    %c0_0 = arith.constant 0 : index
    %0 = vector.load %arg1[%c0, %c0_0] : memref<64x512xf32, #tpu.memory_space<vmem>>, vector<64x512xf32>
    %1 = arith.truncf %0 : vector<64x512xf32> to vector<64x512xbf16>
    %c0_1 = arith.constant 0 : index
    %c0_2 = arith.constant 0 : index
    %2 = vector.load %arg2[%c0_1, %c0_2] : memref<512x256xf32, #tpu.memory_space<vmem>>, vector<512x256xf32>
    %3 = arith.truncf %2 : vector<512x256xf32> to vector<512x256xbf16>
    %cst = arith.constant dense<0.000000e+00> : vector<64x256xf32>
    %4 = tpu.matmul %1, %3, %cst {dimension_numbers = #tpu.dot_dimension_numbers<[1], [0], [0], [1], [0, 0, 1, 1], [], []>} : vector<64x512xbf16>, vector<512x256xbf16>, vector<64x256xf32> -> vector<64x256xf32>
    %c0_3 = arith.constant 0 : index
    %c0_4 = arith.constant 0 : index
    %5 = vector.load %arg3[%c0_3, %c0_4] : memref<1x256xf32, #tpu.memory_space<vmem>>, vector<1x256xf32>
    %6 = vector.broadcast %5 : vector<1x256xf32> to vector<64x256xf32>
    %7 = arith.addf %4, %6 : vector<64x256xf32>
    %cst_5 = arith.constant 0.000000e+00 : f32
    %8 = vector.broadcast %cst_5 : f32 to vector<64x256xf32>
    %9 = arith.maximumf %7, %8 : vector<64x256xf32>
    %c0_6 = arith.constant 0 : index
    %c0_7 = arith.constant 0 : index
    %10 = vector.load %arg4[%c0_6, %c0_7] : memref<256x256xf32, #tpu.memory_space<vmem>>, vector<256x256xf32>
    %11 = arith.truncf %10 : vector<256x256xf32> to vector<256x256xbf16>
    %12 = arith.truncf %9 : vector<64x256xf32> to vector<64x256xbf16>
    %cst_8 = arith.constant dense<0.000000e+00> : vector<64x256xf32>
    %13 = tpu.matmul %12, %11, %cst_8 {dimension_numbers = #tpu.dot_dimension_numbers<[1], [0], [0], [1], [0, 0, 1, 1], [], []>} : vector<64x256xbf16>, vector<256x256xbf16>, vector<64x256xf32> -> vector<64x256xf32>
    %c0_9 = arith.constant 0 : index
    %c0_10 = arith.constant 0 : index
    %14 = vector.load %arg5[%c0_9, %c0_10] : memref<1x256xf32, #tpu.memory_space<vmem>>, vector<1x256xf32>
    %15 = vector.broadcast %14 : vector<1x256xf32> to vector<64x256xf32>
    %16 = arith.addf %13, %15 : vector<64x256xf32>
    %c0_11 = arith.constant 0 : index
    %c0_12 = arith.constant 0 : index
    %17 = vector.load %arg6[%c0_11, %c0_12] : memref<64x256xf32, #tpu.memory_space<vmem>>, vector<64x256xf32>
    tpu.vector_store %arg6[%c0_11, %c0_12], %16 {strides = array<i32>} : memref<64x256xf32, #tpu.memory_space<vmem>>, vector<64x256xf32>,
    return
  }
  func.func @transform_0(%arg0: i32) -> (i32, i32) {
    %c0_i32 = arith.constant 0 : i32
    %c0_i32_0 = arith.constant 0 : i32
    return %arg0, %c0_i32 : i32, i32
  }
  func.func @transform_1(%arg0: i32) -> (i32, i32) {
    %c0_i32 = arith.constant 0 : i32
    %c0_i32_0 = arith.constant 0 : i32
    %c0_i32_1 = arith.constant 0 : i32
    return %c0_i32, %c0_i32_0 : i32, i32
  }
  func.func @transform_2(%arg0: i32) -> (i32, i32) {
    %c0_i32 = arith.constant 0 : i32
    %c0_i32_0 = arith.constant 0 : i32
    %c0_i32_1 = arith.constant 0 : i32
    return %c0_i32, %c0_i32_0 : i32, i32
  }
  func.func @transform_3(%arg0: i32) -> (i32, i32) {
    %c0_i32 = arith.constant 0 : i32
    %c0_i32_0 = arith.constant 0 : i32
    %c0_i32_1 = arith.constant 0 : i32
    return %c0_i32, %c0_i32_0 : i32, i32
  }
  func.func @transform_4(%arg0: i32) -> (i32, i32) {
    %c0_i32 = arith.constant 0 : i32
    %c0_i32_0 = arith.constant 0 : i32
    %c0_i32_1 = arith.constant 0 : i32
    return %c0_i32, %c0_i32_0 : i32, i32
  }
  func.func @transform_5(%arg0: i32) -> (i32, i32) {
    %c0_i32 = arith.constant 0 : i32
    %c0_i32_0 = arith.constant 0 : i32
    return %arg0, %c0_i32 : i32, i32
  }
}

</mosaic_0001>

<bundles_post_ra>
// kernel: tpu_custom_call.1
= control target key start
LH: loop header
LB: loop body
LE: loop exit
PB: predicated region body
PF: predicated region fallthrough
CT: control target
= control target key end

     0   :  { %10 = vsyncpa [#allocation3], 0  ;;  %s946_s0 = inlined_call_operand.hbm [shape: f32[64,512], index: 0, kind: input, shape index: {}]   ;;  %s947_s1 = inlined_call_operand.hbm [shape: f32[512,256], index: 1, kind: input, shape index: {}]   ;;  %s948_s2 = inlined_call_operand.vmem [shape: f32[1,256], index: 2, kind: input, shape index: {}]   ;;  %s949_s3 = inlined_call_operand.hbm [shape: f32[256,256], index: 3, kind: input, shape index: {}]   ;;  %s950_s4 = inlined_call_operand.vmem [shape: f32[1,256], index: 4, kind: input, shape index: {}]   ;;  %s951_s5 = inlined_call_operand.hbm [shape: f32[64,256], index: 5, kind: output, shape index: {}]  }
   0x1   :  { %11 = vsyncpa [#allocation6], 0 }
   0x2   :  { %12 = vsyncpa [#allocation4], 0  ;;  %s833_s18 = smov [#allocation5]   ;;  %s739_s22 = scalar_lea.hbm %s947_s1, 16384 }
   0x3   :  { %s30_s19 = sshll.u32 %s833_s18, 4  ;;  %p740_p0 = scmp.ne.s32.totalorder %s947_s1, %s739_s22  ;;  %s31_s19 = int_to_ptr.vmem [resolvable:$true] %s30_s19 }
   0x4   :  { %p743_p1 = scmp.lt.u32.totalorder %s739_s22, %s947_s1 }
   0x6   :  { %p745_p2 = pnand %p743_p1, %p740_p0 }
   0x8   :  { %748 = shalt.err (!%p745_p2)
}
   0x9   :  { %s749_s27 = scalar_lea.vmem %s31_s19, 16384  ;;  %p754_p4 = scmp.lt.s32.totalorder %s31_s19, %s31_s19 }
   0xa   :  { %p750_p3 = scmp.ne.s32.totalorder %s31_s19, %s749_s27  ;;  %p755_p5 = scmp.lt.s32.totalorder %s749_s27, %s749_s27 }
   0xc   :  { %p756_p6 = por %p755_p5, %p754_p4 }
   0xe   :  { %p757_p7 = pnand %p756_p6, %p750_p3 }
  0x10   :  { %760 = shalt.err (!%p757_p7)
}
  0x11   :  { %s834_s28 = smov 256   ;;  %s835_s29 = smov 16  }
  0x12   :  { %36 = dma.hbm_to_vmem [thread:$0]  %s947_s1, 16384, %s31_s19, [#allocation6], %s834_s28, %s834_s28, %s835_s29  }
  0x13   :  { %s836_s7 = smov [#allocation2]   ;;  %s761_s11 = scalar_lea.hbm %s946_s0, 4096 }
  0x14   :  { %s18_s8 = sshll.u32 %s836_s7, 4  ;;  %p762_p8 = scmp.ne.s32.totalorder %s946_s0, %s761_s11  ;;  %s19_s8 = int_to_ptr.vmem [resolvable:$true] %s18_s8 }
  0x15   :  { %p765_p9 = scmp.lt.u32.totalorder %s761_s11, %s946_s0 }
  0x17   :  { %p767_p10 = pnand %p765_p9, %p762_p8 }
  0x19   :  { %770 = shalt.err (!%p767_p10)
}
  0x1a   :  { %s771_s16 = scalar_lea.vmem %s19_s8, 4096  ;;  %p776_p12 = scmp.lt.s32.totalorder %s19_s8, %s19_s8 }
  0x1b   :  { %p772_p11 = scmp.ne.s32.totalorder %s19_s8, %s771_s16  ;;  %p777_p13 = scmp.lt.s32.totalorder %s771_s16, %s771_s16 }
  0x1d   :  { %p778_p0 = por %p777_p13, %p776_p12 }
  0x1f   :  { %p779_p1 = pnand %p778_p0, %p772_p11 }
  0x21   :  { %782 = shalt.err (!%p779_p1)
}
  0x22   :  { %s837_s1 = smov 512   ;;  %s838_s17 = smov 32  }
  0x23   :  { %24 = dma.hbm_to_vmem [thread:$0]  %s946_s0, 4096, %s19_s8, [#allocation3], %s837_s1, %s837_s1, %s838_s17  }
  0x24   :  { %s839_s20 = smov [#allocation7]   ;;  %s783_s24 = scalar_lea.hbm %s949_s3, 8192 }
  0x25   :  { %s44_s21 = sshll.u32 %s839_s20, 4  ;;  %p784_p2 = scmp.ne.s32.totalorder %s949_s3, %s783_s24  ;;  %s45_s21 = int_to_ptr.vmem [resolvable:$true] %s44_s21 }
  0x26   :  { %p787_p3 = scmp.lt.u32.totalorder %s783_s24, %s949_s3 }
  0x28   :  { %p789_p4 = pnand %p787_p3, %p784_p2 }
  0x2a   :  { %792 = shalt.err (!%p789_p4)
}
  0x2b   :  { %s793_s6 = scalar_lea.vmem %s45_s21, 8192  ;;  %p798_p6 = scmp.lt.s32.totalorder %s45_s21, %s45_s21 }
  0x2c   :  { %p794_p5 = scmp.ne.s32.totalorder %s45_s21, %s793_s6  ;;  %p799_p7 = scmp.lt.s32.totalorder %s793_s6, %s793_s6 }
  0x2e   :  { %p800_p8 = por %p799_p7, %p798_p6 }
  0x30   :  { %p801_p9 = pnand %p800_p8, %p794_p5 }
  0x32   :  { %804 = shalt.err (!%p801_p9)
}
  0x33   :  { %50 = dma.hbm_to_vmem [thread:$0]  %s949_s3, 8192, %s45_s21, [#allocation6], %s834_s28, %s834_s28, %s835_s29  }
  0x34   :  { %827 = dma.done.wait [#allocation3], 4096  }
  0x35   :  { %828 = vsyncadd [#allocation3], 4294963200 }
  0x36   :  { %829 = dma.done.wait [#allocation6], 24576  }
  0x37   :  { %830 = vsyncadd [#allocation6], 4294942720  ;;  %v111_v0 = vld [vmem:[#allocation5 + $0x8] sm:$0xff]  ;;  %v113_v1 = vld [vmem:[#allocation5 + $0x18] sm:$0xff] }
  0x38   :  { %v110_v2 = vld [vmem:[#allocation5] sm:$0xff]  ;;  %v239_v3 = vpack.c.bf16 %v113_v1, %v111_v0  ;;  %v112_v4 = vld [vmem:[#allocation5 + $0x10] sm:$0xff]  ;;  %v115_v5 = vld [vmem:[#allocation5 + $0x28] sm:$0xff] }
  0x39   :  { %v117_v6 = vld [vmem:[#allocation5 + $0x38] sm:$0xff]  ;;  %v238_v7 = vpack.c.bf16 %v112_v4, %v110_v2  ;;  %v114_v9 = vld [vmem:[#allocation5 + $0x20] sm:$0xff]  ;;  %v116_v10 = vld [vmem:[#allocation5 + $0x30] sm:$0xff] }
  0x3a   :  { %v241_v8 = vpack.c.bf16 %v117_v6, %v115_v5  ;;  %v119_v11 = vld [vmem:[#allocation5 + $0x48] sm:$0xff]  ;;  %314 = vmatprep.subr.bf16.mxu0 %v239_v3  ;;  %v121_v12 = vld [vmem:[#allocation5 + $0x58] sm:$0xff]  ;;  %v240_v13 = vpack.c.bf16 %v116_v10, %v114_v9  ;;  %v118_v15 = vld [vmem:[#allocation5 + $0x40] sm:$0xff] }
  0x3b   :  { %315 = vmatpush1.bf16.msra.mxu0 %v238_v7  ;;  %v243_v14 = vpack.c.bf16 %v121_v12, %v119_v11  ;;  %v120_v16 = vld [vmem:[#allocation5 + $0x50] sm:$0xff]  ;;  %v123_v17 = vld [vmem:[#allocation5 + $0x68] sm:$0xff]  ;;  %v125_v18 = vld [vmem:[#allocation5 + $0x78] sm:$0xff] }
  0x3c   :  { %316 = vmatprep.subr.bf16.mxu0 %v241_v8  ;;  %v242_v19 = vpack.c.bf16 %v120_v16, %v118_v15  ;;  %v245_v20 = vpack.c.bf16 %v125_v18, %v123_v17  ;;  %v122_v21 = vld [vmem:[#allocation5 + $0x60] sm:$0xff]  ;;  %v124_v22 = vld [vmem:[#allocation5 + $0x70] sm:$0xff]  ;;  %v127_v23 = vld [vmem:[#allocation5 + $0x88] sm:$0xff] }
  0x3d   :  { %v129_v24 = vld [vmem:[#allocation5 + $0x98] sm:$0xff]  ;;  %v244_v25 = vpack.c.bf16 %v124_v22, %v122_v21  ;;  %v126_v27 = vld [vmem:[#allocation5 + $0x80] sm:$0xff]  ;;  %v128_v28 = vld [vmem:[#allocation5 + $0x90] sm:$0xff] }
  0x3e   :  { %v247_v26 = vpack.c.bf16 %v129_v24, %v127_v23  ;;  %v131_v29 = vld [vmem:[#allocation5 + $0xa8] sm:$0xff]  ;;  %v133_v30 = vld [vmem:[#allocation5 + $0xb8] sm:$0xff]  ;;  %v246_v31 = vpack.c.bf16 %v128_v28, %v126_v27  ;;  %v130_v33 = vld [vmem:[#allocation5 + $0xa0] sm:$0xff] }
  0x3f   :  { %317 = vmatpush1.bf16.msra.mxu0 %v240_v13  ;;  %v249_v32 = vpack.c.bf16 %v133_v30, %v131_v29  ;;  %v132_v34 = vld [vmem:[#allocation5 + $0xb0] sm:$0xff]  ;;  %v135_v35 = vld [vmem:[#allocation5 + $0xc8] sm:$0xff]  ;;  %v137_v36 = vld [vmem:[#allocation5 + $0xd8] sm:$0xff] }
  0x40   :  { %318 = vmatprep.subr.bf16.mxu0 %v243_v14  ;;  %v248_v37 = vpack.c.bf16 %v132_v34, %v130_v33  ;;  %v134_v38 = vld [vmem:[#allocation5 + $0xc0] sm:$0xff]  ;;  %v251_v39 = vpack.c.bf16 %v137_v36, %v135_v35  ;;  %v136_v40 = vld [vmem:[#allocation5 + $0xd0] sm:$0xff]  ;;  %v63_v41 = vld [vmem:[#allocation2 + $0x8] sm:$0xff] }
  0x41   :  { %v67_v42 = vld [vmem:[#allocation2 + $0x28] sm:$0xff]  ;;  %v141_v44 = vld [vmem:[#allocation5 + $0xf8] sm:$0xff]  ;;  %v250_v46 = vpack.c.bf16 %v136_v40, %v134_v38  ;;  %v138_v48 = vld [vmem:[#allocation5 + $0xe0] sm:$0xff] }
  0x42   :  { %v139_v43 = vld [vmem:[#allocation5 + $0xe8] sm:$0xff]  ;;  %v95_v45 = vpack.c.bf16 %v67_v42, %v63_v41  ;;  %v140_v49 = vld [vmem:[#allocation5 + $0xf0] sm:$0xff]  ;;  %v145_v51 = vld [vmem:[#allocation5 + $0x118] sm:$0xff] }
  0x43   :  { %319 = vmatpush1.bf16.msra.mxu0 %v242_v19  ;;  %v253_v47 = vpack.c.bf16 %v141_v44, %v139_v43  ;;  %v143_v50 = vld [vmem:[#allocation5 + $0x108] sm:$0xff]  ;;  %v252_v52 = vpack.c.bf16 %v140_v49, %v138_v48  ;;  %v142_v54 = vld [vmem:[#allocation5 + $0x100] sm:$0xff]  ;;  %v144_v55 = vld [vmem:[#allocation5 + $0x110] sm:$0xff] }
  0x44   :  { %320 = vmatprep.subr.bf16.mxu0 %v245_v20  ;;  %346 = vmatprep.mubr.bf16.mxu0 %v95_v45  ;;  %v255_v53 = vpack.c.bf16 %v145_v51, %v143_v50  ;;  %v147_v56 = vld [vmem:[#allocation5 + $0x128] sm:$0xff]  ;;  %v149_v57 = vld [vmem:[#allocation5 + $0x138] sm:$0xff]  ;;  %v254_v58 = vpack.c.bf16 %v144_v55, %v142_v54  ;;  %v146_v60 = vld [vmem:[#allocation5 + $0x120] sm:$0xff] }
  0x45   :  { %v257_v59 = vpack.c.bf16 %v149_v57, %v147_v56  ;;  %v148_v61 = vld [vmem:[#allocation5 + $0x130] sm:$0xff]  ;;  %v151_v62 = vld [vmem:[#allocation5 + $0x148] sm:$0xff]  ;;  %v153_v63 = vld [vmem:[#allocation5 + $0x158] sm:$0xff] }
  0x46   :  { %v256_v0 = vpack.c.bf16 %v148_v61, %v146_v60  ;;  %v259_v1 = vpack.c.bf16 %v153_v63, %v151_v62  ;;  %v150_v2 = vld [vmem:[#allocation5 + $0x140] sm:$0xff]  ;;  %v152_v3 = vld [vmem:[#allocation5 + $0x150] sm:$0xff]  ;;  %v155_v4 = vld [vmem:[#allocation5 + $0x168] sm:$0xff] }
  0x47   :  { %321 = vmatpush1.bf16.msra.mxu0 %v244_v25  ;;  %v157_v5 = vld [vmem:[#allocation5 + $0x178] sm:$0xff]  ;;  %v258_v6 = vpack.c.bf16 %v152_v3, %v150_v2  ;;  %v154_v8 = vld [vmem:[#allocation5 + $0x160] sm:$0xff]  ;;  %v156_v9 = vld [vmem:[#allocation5 + $0x170] sm:$0xff] }
  0x48   :  { %322 = vmatprep.subr.bf16.mxu0 %v247_v26  ;;  %v261_v7 = vpack.c.bf16 %v157_v5, %v155_v4  ;;  %v159_v10 = vld [vmem:[#allocation5 + $0x188] sm:$0xff]  ;;  %v161_v11 = vld [vmem:[#allocation5 + $0x198] sm:$0xff]  ;;  %v260_v12 = vpack.c.bf16 %v156_v9, %v154_v8  ;;  %v158_v14 = vld [vmem:[#allocation5 + $0x180] sm:$0xff] }
  0x49   :  { %v263_v13 = vpack.c.bf16 %v161_v11, %v159_v10  ;;  %v160_v15 = vld [vmem:[#allocation5 + $0x190] sm:$0xff]  ;;  %v163_v16 = vld [vmem:[#allocation5 + $0x1a8] sm:$0xff]  ;;  %v165_v17 = vld [vmem:[#allocation5 + $0x1b8] sm:$0xff] }
  0x4a   :  { %v262_v18 = vpack.c.bf16 %v160_v15, %v158_v14  ;;  %v265_v19 = vpack.c.bf16 %v165_v17, %v163_v16  ;;  %v162_v20 = vld [vmem:[#allocation5 + $0x1a0] sm:$0xff]  ;;  %v164_v21 = vld [vmem:[#allocation5 + $0x1b0] sm:$0xff]  ;;  %v167_v22 = vld [vmem:[#allocation5 + $0x1c8] sm:$0xff] }
  0x4b   :  { %323 = vmatpush1.bf16.msra.mxu0 %v246_v31  ;;  %v169_v23 = vld [vmem:[#allocation5 + $0x1d8] sm:$0xff]  ;;  %v264_v24 = vpack.c.bf16 %v164_v21, %v162_v20  ;;  %v166_v25 = vld [vmem:[#allocation5 + $0x1c0] sm:$0xff]  ;;  %v168_v26 = vld [vmem:[#allocation5 + $0x1d0] sm:$0xff] }
  0x4c   :  { %324 = vmatprep.subr.bf16.mxu0 %v249_v32  ;;  %v171_v27 = vld [vmem:[#allocation5 + $0x1e8] sm:$0xff]  ;;  %v267_v28 = vpack.c.bf16 %v169_v23, %v167_v22  ;;  %v173_v29 = vld [vmem:[#allocation5 + $0x1f8] sm:$0xff]  ;;  %v476_v33 = vld [vmem:[#allocation7] sm:$0xff]  ;;  %v266_v40 = vpack.c.bf16 %v168_v26, %v166_v25 }
  0x4d   :  { %v477_v30 = vld [vmem:[#allocation7 + $0x8] sm:$0xff]  ;;  %v479_v31 = vld [vmem:[#allocation7 + $0x18] sm:$0xff]  ;;  %v478_v34 = vld [vmem:[#allocation7 + $0x10] sm:$0xff]  ;;  %v269_v44 = vpack.c.bf16 %v173_v29, %v171_v27 }
  0x4e   :  { %v541_v32 = vpack.c.bf16 %v479_v31, %v477_v30  ;;  %v481_v35 = vld [vmem:[#allocation7 + $0x28] sm:$0xff]  ;;  %v540_v36 = vpack.c.bf16 %v478_v34, %v476_v33  ;;  %v480_v38 = vld [vmem:[#allocation7 + $0x20] sm:$0xff]  ;;  %v487_v43 = vld [vmem:[#allocation7 + $0x58] sm:$0xff] }
  0x4f   :  { %325 = vmatpush1.bf16.msra.mxu0 %v248_v37  ;;  %v483_v37 = vld [vmem:[#allocation7 + $0x38] sm:$0xff]  ;;  %v485_v42 = vld [vmem:[#allocation7 + $0x48] sm:$0xff]  ;;  %v170_v45 = vld [vmem:[#allocation5 + $0x1e0] sm:$0xff] }
  0x50   :  { %326 = vmatprep.subr.bf16.mxu0 %v251_v39  ;;  %v482_v39 = vld [vmem:[#allocation7 + $0x30] sm:$0xff]  ;;  %592 = vmatprep.subr.bf16.mxu1 %v541_v32  ;;  %v543_v41 = vpack.c.bf16 %v483_v37, %v481_v35  ;;  %v177_v49 = vld [vmem:[#allocation5 + $0x218] sm:$0xff]  ;;  %v545_v50 = vpack.c.bf16 %v487_v43, %v485_v42  ;;  %v484_v51 = vld [vmem:[#allocation7 + $0x40] sm:$0xff] }
  0x51   :  { %593 = vmatpush1.bf16.msra.mxu1 %v540_v36  ;;  %v542_v48 = vpack.c.bf16 %v482_v39, %v480_v38  ;;  %v489_v54 = vld [vmem:[#allocation7 + $0x68] sm:$0xff]  ;;  %v491_v55 = vld [vmem:[#allocation7 + $0x78] sm:$0xff]  ;;  %v66_v57 = vld [vmem:[#allocation2 + $0x20] sm:$0xff] }
  0x52   :  { %594 = vmatprep.subr.bf16.mxu1 %v543_v41  ;;  %v179_v61 = vld [vmem:[#allocation5 + $0x228] sm:$0xff]  ;;  %v547_v2 = vpack.c.bf16 %v491_v55, %v489_v54  ;;  %v488_v3 = vld [vmem:[#allocation7 + $0x60] sm:$0xff]  ;;  %v490_v4 = vld [vmem:[#allocation7 + $0x70] sm:$0xff] }
  0x53   :  { %327 = vmatpush1.bf16.msra.mxu0 %v250_v46  ;;  %v172_v46 = vld [vmem:[#allocation5 + $0x1f0] sm:$0xff]  ;;  %v71_v62 = vld [vmem:[#allocation2 + $0x48] sm:$0xff]  ;;  %v178_v11 = vld [vmem:[#allocation5 + $0x220] sm:$0xff]  ;;  %v546_v14 = vpack.c.bf16 %v490_v4, %v488_v3 }
  0x54   :  { %328 = vmatprep.subr.bf16.mxu0 %v253_v47  ;;  %v175_v47 = vld [vmem:[#allocation5 + $0x208] sm:$0xff]  ;;  %v268_v56 = vpack.c.bf16 %v172_v46, %v170_v45  ;;  %v185_v15 = vld [vmem:[#allocation5 + $0x258] sm:$0xff]  ;;  %v492_v17 = vld [vmem:[#allocation7 + $0x80] sm:$0xff] }
  0x55   :  { %v271_v60 = vpack.c.bf16 %v177_v49, %v175_v47  ;;  %v75_v63 = vld [vmem:[#allocation2 + $0x68] sm:$0xff]  ;;  %595 = vmatpush1.bf16.msra.mxu1 %v542_v48  ;;  %v499_v21 = vld [vmem:[#allocation7 + $0xb8] sm:$0xff]  ;;  %v184_v23 = vld [vmem:[#allocation5 + $0x250] sm:$0xff] }
  0x56   :  { %596 = vmatprep.subr.bf16.mxu1 %v545_v50  ;;  %v99_v9 = vpack.c.bf16 %v75_v63, %v71_v62  ;;  %v497_v20 = vld [vmem:[#allocation7 + $0xa8] sm:$0xff]  ;;  %v74_v25 = vld [vmem:[#allocation2 + $0x60] sm:$0xff]  ;;  %v189_v31 = vld [vmem:[#allocation5 + $0x278] sm:$0xff] }
  0x57   :  { %329 = vmatpush1.bf16.msra.mxu0 %v252_v52  ;;  %v486_v52 = vld [vmem:[#allocation7 + $0x50] sm:$0xff]  ;;  %v187_v27 = vld [vmem:[#allocation5 + $0x268] sm:$0xff]  ;;  %v551_v32 = vpack.c.bf16 %v499_v21, %v497_v20  ;;  %v496_v33 = vld [vmem:[#allocation7 + $0xa0] sm:$0xff] }
  0x58   :  { %330 = vmatprep.subr.bf16.mxu0 %v255_v53  ;;  %v62_v53 = vld [vmem:[#allocation2] sm:$0xff]  ;;  %v83_v29 = vld [vmem:[#allocation2 + $0xa8] sm:$0xff]  ;;  %v498_v34 = vld [vmem:[#allocation7 + $0xb0] sm:$0xff] }
  0x59   :  { %v94_v5 = vpack.c.bf16 %v66_v57, %v62_v53  ;;  %v501_v36 = vld [vmem:[#allocation7 + $0xc8] sm:$0xff]  ;;  %v503_v37 = vld [vmem:[#allocation7 + $0xd8] sm:$0xff]  ;;  %v186_v41 = vld [vmem:[#allocation5 + $0x260] sm:$0xff] }
  0x5a   :  { %v188_v42 = vld [vmem:[#allocation5 + $0x270] sm:$0xff]  ;;  %v191_v43 = vld [vmem:[#allocation5 + $0x288] sm:$0xff]  ;;  %v193_v45 = vld [vmem:[#allocation5 + $0x298] sm:$0xff]  ;;  %v553_v46 = vpack.c.bf16 %v503_v37, %v501_v36 }
  0x5b   :  { %331 = vmatpush1.bf16.msra.mxu0 %v254_v58  ;;  %v174_v58 = vld [vmem:[#allocation5 + $0x200] sm:$0xff]  ;;  %v502_v48 = vld [vmem:[#allocation7 + $0xd0] sm:$0xff]  ;;  %v505_v50 = vld [vmem:[#allocation7 + $0xe8] sm:$0xff] }
  0x5c   :  { %332 = vmatprep.subr.bf16.mxu0 %v257_v59  ;;  %v176_v59 = vld [vmem:[#allocation5 + $0x210] sm:$0xff]  ;;  %v500_v47 = vld [vmem:[#allocation7 + $0xc0] sm:$0xff]  ;;  %v195_v57 = vld [vmem:[#allocation5 + $0x2a8] sm:$0xff] }
  0x5d   :  { %v270_v8 = vpack.c.bf16 %v176_v59, %v174_v58  ;;  %v190_v49 = vld [vmem:[#allocation5 + $0x280] sm:$0xff]  ;;  %v192_v53 = vld [vmem:[#allocation5 + $0x290] sm:$0xff]  ;;  %v87_v58 = vld [vmem:[#allocation2 + $0xc8] sm:$0xff] }
  0x5e   :  { %v78_v54 = vld [vmem:[#allocation2 + $0x80] sm:$0xff]  ;;  %v91_v59 = vld [vmem:[#allocation2 + $0xe8] sm:$0xff]  ;;  %v511_v3 = vld [vmem:[#allocation7 + $0x118] sm:$0xff]  ;;  %v278_v4 = vpack.c.bf16 %v192_v53, %v190_v49 }
  0x5f   :  { %333 = vmatpush1.bf16.msra.mxu0 %v256_v0  ;;  %v544_v0 = vpack.c.bf16 %v486_v52, %v484_v51  ;;  %v507_v51 = vld [vmem:[#allocation7 + $0xf8] sm:$0xff]  ;;  %v276_v52 = vpack.c.bf16 %v188_v42, %v186_v41  ;;  %v82_v55 = vld [vmem:[#allocation2 + $0xa0] sm:$0xff] }
  0x60   :  { %334 = vmatprep.subr.bf16.mxu0 %v259_v1  ;;  %v181_v1 = vld [vmem:[#allocation5 + $0x238] sm:$0xff]  ;;  %v555_v62 = vpack.c.bf16 %v507_v51, %v505_v50  ;;  %v504_v63 = vld [vmem:[#allocation7 + $0xe0] sm:$0xff]  ;;  %v208_v50 = vld [vmem:[#allocation5 + $0x310] sm:$0xff] }
  0x61   :  { %v273_v10 = vpack.c.bf16 %v181_v1, %v179_v61  ;;  %597 = vmatpush1.bf16.msra.mxu1 %v544_v0  ;;  %v197_v61 = vld [vmem:[#allocation5 + $0x2b8] sm:$0xff]  ;;  %v506_v0 = vld [vmem:[#allocation7 + $0xf0] sm:$0xff]  ;;  %v102_v1 = vpack.c.bf16 %v82_v55, %v78_v54  ;;  %v86_v20 = vld [vmem:[#allocation2 + $0xc0] sm:$0xff] }
  0x62   :  { %598 = vmatprep.subr.bf16.mxu1 %v547_v2  ;;  %v509_v2 = vld [vmem:[#allocation7 + $0x108] sm:$0xff]  ;;  %v90_v21 = vld [vmem:[#allocation2 + $0xe0] sm:$0xff]  ;;  %v209_v41 = vld [vmem:[#allocation5 + $0x318] sm:$0xff] }
  0x63   :  { %335 = vmatpush1.bf16.msra.mxu0 %v258_v6  ;;  %v493_v6 = vld [vmem:[#allocation7 + $0x88] sm:$0xff]  ;;  %v202_v37 = vld [vmem:[#allocation5 + $0x2e0] sm:$0xff]  ;;  %v213_v53 = vld [vmem:[#allocation5 + $0x338] sm:$0xff] }
  0x64   :  { %336 = vmatprep.subr.bf16.mxu0 %v261_v7  ;;  %v495_v7 = vld [vmem:[#allocation7 + $0x98] sm:$0xff]  ;;  %v206_v49 = vld [vmem:[#allocation5 + $0x300] sm:$0xff]  ;;  %v211_v51 = vld [vmem:[#allocation5 + $0x328] sm:$0xff] }
  0x65   :  { %v549_v16 = vpack.c.bf16 %v495_v7, %v493_v6  ;;  %599 = vmatpush1.bf16.msra.mxu1 %v546_v14  ;;  %v281_v6 = vpack.c.bf16 %v197_v61, %v195_v57  ;;  %v194_v7 = vld [vmem:[#allocation5 + $0x2a0] sm:$0xff]  ;;  %v510_v14 = vld [vmem:[#allocation7 + $0x110] sm:$0xff]  ;;  %v525_v57 = vld [vmem:[#allocation7 + $0x188] sm:$0xff] }
  0x66   :  { %v520_v55 = vld [vmem:[#allocation7 + $0x160] sm:$0xff] }
  0x67   :  { %337 = vmatpush1.bf16.msra.mxu0 %v260_v12  ;;  %v180_v12 = vld [vmem:[#allocation5 + $0x230] sm:$0xff]  ;;  %600 = vmatprep.subr.bf16.mxu1 %v549_v16  ;;  %v513_v16 = vld [vmem:[#allocation7 + $0x128] sm:$0xff]  ;;  %v210_v61 = vld [vmem:[#allocation5 + $0x320] sm:$0xff] }
  0x68   :  { %338 = vmatprep.subr.bf16.mxu0 %v263_v13  ;;  %v183_v13 = vld [vmem:[#allocation5 + $0x248] sm:$0xff]  ;;  %v272_v22 = vpack.c.bf16 %v180_v12, %v178_v11  ;;  %v201_v11 = vld [vmem:[#allocation5 + $0x2d8] sm:$0xff]  ;;  %v557_v12 = vpack.c.bf16 %v511_v3, %v509_v2  ;;  %v524_v3 = vld [vmem:[#allocation7 + $0x180] sm:$0xff] }
  0x69   :  { %v275_v26 = vpack.c.bf16 %v185_v15, %v183_v13  ;;  %v508_v13 = vld [vmem:[#allocation7 + $0x100] sm:$0xff] }
  0x6a   :  { %v198_v15 = vld [vmem:[#allocation5 + $0x2c0] sm:$0xff] }
  0x6b   :  { %339 = vmatpush1.bf16.msra.mxu0 %v262_v18  ;;  %v494_v18 = vld [vmem:[#allocation7 + $0x90] sm:$0xff] }
  0x6c   :  { %340 = vmatprep.subr.bf16.mxu0 %v265_v19  ;;  %v182_v19 = vld [vmem:[#allocation5 + $0x240] sm:$0xff]  ;;  %v548_v30 = vpack.c.bf16 %v494_v18, %v492_v17  ;;  %v515_v17 = vld [vmem:[#allocation7 + $0x138] sm:$0xff] }
  0x6d   :  { %v274_v38 = vpack.c.bf16 %v184_v23, %v182_v19  ;;  %v200_v19 = vld [vmem:[#allocation5 + $0x2d0] sm:$0xff]  ;;  %v203_v23 = vld [vmem:[#allocation5 + $0x2e8] sm:$0xff] }
  0x6e   :  { %601 = vmatpush1.bf16.msra.mxu1 %v548_v30  ;;  %v514_v30 = vld [vmem:[#allocation7 + $0x130] sm:$0xff] }
  0x6f   :  { %341 = vmatpush1.bf16.msra.mxu0 %v264_v24  ;;  %v70_v24 = vld [vmem:[#allocation2 + $0x40] sm:$0xff]  ;;  %602 = vmatprep.subr.bf16.mxu1 %v551_v32  ;;  %v517_v32 = vld [vmem:[#allocation7 + $0x148] sm:$0xff] }
  0x70   :  { %342 = vmatprep.subr.bf16.mxu0 %v267_v28  ;;  %v79_v28 = vld [vmem:[#allocation2 + $0x88] sm:$0xff]  ;;  %v98_v35 = vpack.c.bf16 %v74_v25, %v70_v24  ;;  %v65_v24 = vld [vmem:[#allocation2 + $0x18] sm:$0xff] }
  0x71   :  { %v103_v39 = vpack.c.bf16 %v83_v29, %v79_v28  ;;  %v69_v25 = vld [vmem:[#allocation2 + $0x38] sm:$0xff]  ;;  %v559_v28 = vpack.c.bf16 %v515_v17, %v513_v16  ;;  %v512_v29 = vld [vmem:[#allocation7 + $0x120] sm:$0xff] }
  0x72   :  { %v218_v17 = vld [vmem:[#allocation5 + $0x360] sm:$0xff] }
  0x73   :  { %343 = vmatpush1.bf16.msra.mxu0 %v266_v40  ;;  %v277_v40 = vpack.c.bf16 %v189_v31, %v187_v27  ;;  %v205_v27 = vld [vmem:[#allocation5 + $0x2f8] sm:$0xff]  ;;  %v106_v31 = vpack.c.bf16 %v90_v21, %v86_v20 }
  0x74   :  { %344 = vmatprep.subr.bf16.mxu0 %v269_v44  ;;  %v550_v44 = vpack.c.bf16 %v498_v34, %v496_v33  ;;  %v519_v33 = vld [vmem:[#allocation7 + $0x158] sm:$0xff]  ;;  %v282_v34 = vpack.c.bf16 %v200_v19, %v198_v15  ;;  %v285_v36 = vpack.c.bf16 %v205_v27, %v203_v23  ;;  %v223_v19 = vld [vmem:[#allocation5 + $0x388] sm:$0xff]  ;;  %v222_v23 = vld [vmem:[#allocation5 + $0x380] sm:$0xff] }
  0x75   :  { %v561_v42 = vpack.c.bf16 %v519_v33, %v517_v32  ;;  %v225_v20 = vld [vmem:[#allocation5 + $0x398] sm:$0xff] }
  0x76   :  { %603 = vmatpush1.bf16.msra.mxu1 %v550_v44  ;;  %v518_v44 = vld [vmem:[#allocation7 + $0x150] sm:$0xff]  ;;  %v233_v32 = vld [vmem:[#allocation5 + $0x3d8] sm:$0xff] }
  0x77   :  { %345 = vmatpush1.bf16.msra.mxu0 %v268_v56  ;;  %v279_v56 = vpack.c.bf16 %v193_v45, %v191_v43  ;;  %604 = vmatprep.subr.bf16.mxu1 %v553_v46  ;;  %v516_v43 = vld [vmem:[#allocation7 + $0x140] sm:$0xff]  ;;  %v521_v45 = vld [vmem:[#allocation7 + $0x168] sm:$0xff]  ;;  %v523_v46 = vld [vmem:[#allocation7 + $0x178] sm:$0xff] }
  0x78   :  { %387 = vmatprep.subr.bf16.mxu0 %v271_v60  ;;  %v552_v60 = vpack.c.bf16 %v502_v48, %v500_v47  ;;  %v563_v54 = vpack.c.bf16 %v523_v46, %v521_v45  ;;  %v68_v45 = vld [vmem:[#allocation2 + $0x30] sm:$0xff]  ;;  %v73_v46 = vld [vmem:[#allocation2 + $0x58] sm:$0xff] }
  0x7a   :  { %347 = vmatmul.mubr.bf16.vlgmr.msra.gmra.mrb[0].mxu0 %v94_v5  ;;  %v107_v5 = vpack.c.bf16 %v91_v59, %v87_v58  ;;  %605 = vmatpush1.bf16.msra.mxu1 %v552_v60  ;;  %v527_v58 = vld [vmem:[#allocation7 + $0x198] sm:$0xff]  ;;  %v286_v59 = vpack.c.bf16 %v208_v50, %v206_v49  ;;  %v289_v60 = vpack.c.bf16 %v213_v53, %v211_v51  ;;  %v72_v50 = vld [vmem:[#allocation2 + $0x50] sm:$0xff] }
  0x7b   :  { %388 = vmatpush1.bf16.msra.mxu0 %v270_v8  ;;  %356 = vmatprep.mubr.bf16.mxu0 %v99_v9  ;;  %v196_v8 = vld [vmem:[#allocation5 + $0x2b0] sm:$0xff]  ;;  %v199_v9 = vld [vmem:[#allocation5 + $0x2c8] sm:$0xff]  ;;  %v565_v2 = vpack.c.bf16 %v527_v58, %v525_v57  ;;  %v85_v53 = vld [vmem:[#allocation2 + $0xb8] sm:$0xff] }
  0x7c   :  { %389 = vmatprep.subr.bf16.mxu0 %v273_v10  ;;  %v554_v10 = vpack.c.bf16 %v506_v0, %v504_v63  ;;  %606 = vmatprep.subr.bf16.mxu1 %v555_v62  ;;  %v280_v18 = vpack.c.bf16 %v196_v8, %v194_v7  ;;  %v212_v62 = vld [vmem:[#allocation5 + $0x330] sm:$0xff]  ;;  %v215_v63 = vld [vmem:[#allocation5 + $0x348] sm:$0xff]  ;;  %v89_v58 = vld [vmem:[#allocation2 + $0xd8] sm:$0xff] }
  0x7d   :  { %v288_v7 = vpack.c.bf16 %v212_v62, %v210_v61  ;;  %v76_v51 = vld [vmem:[#allocation2 + $0x70] sm:$0xff] }
  0x7e   :  { %607 = vmatpush1.bf16.msra.mxu1 %v554_v10  ;;  %v216_v10 = vld [vmem:[#allocation5 + $0x350] sm:$0xff] }
  0x7f   :  { %390 = vmatpush1.bf16.msra.mxu0 %v272_v22  ;;  %v283_v22 = vpack.c.bf16 %v201_v11, %v199_v9  ;;  %608 = vmatprep.subr.bf16.mxu1 %v557_v12  ;;  %v214_v9 = vld [vmem:[#allocation5 + $0x340] sm:$0xff]  ;;  %v219_v12 = vld [vmem:[#allocation5 + $0x368] sm:$0xff]  ;;  %v84_v57 = vld [vmem:[#allocation2 + $0xb0] sm:$0xff] }
  0x80   :  { %391 = vmatprep.subr.bf16.mxu0 %v275_v26  ;;  %v556_v26 = vpack.c.bf16 %v510_v14, %v508_v13  ;;  %v221_v13 = vld [vmem:[#allocation5 + $0x378] sm:$0xff]  ;;  %v290_v15 = vpack.c.bf16 %v216_v10, %v214_v9  ;;  %v88_v62 = vld [vmem:[#allocation2 + $0xd0] sm:$0xff]  ;;  %v537_v10 = vld [vmem:[#allocation7 + $0x1e8] sm:$0xff] }
  0x81   :  { %v293_v16 = vpack.c.bf16 %v221_v13, %v219_v12  ;;  %v536_v13 = vld [vmem:[#allocation7 + $0x1e0] sm:$0xff] }
  0x82   :  { %357 = vmatmul.mubr.bf16.gmra.mrb[4].mxu0 %v98_v35  ;;  %v97_v35 = vpack.c.bf16 %v69_v25, %v65_v24  ;;  %609 = vmatpush1.bf16.msra.mxu1 %v556_v26  ;;  %v224_v24 = vld [vmem:[#allocation5 + $0x390] sm:$0xff]  ;;  %v227_v25 = vld [vmem:[#allocation5 + $0x3a8] sm:$0xff]  ;;  %v229_v26 = vld [vmem:[#allocation5 + $0x3b8] sm:$0xff] }
  0x83   :  { %392 = vmatpush1.bf16.msra.mxu0 %v274_v38  ;;  %366 = vmatprep.mubr.bf16.mxu0 %v103_v39  ;;  %v204_v38 = vld [vmem:[#allocation5 + $0x2f0] sm:$0xff]  ;;  %v207_v39 = vld [vmem:[#allocation5 + $0x308] sm:$0xff]  ;;  %v294_v27 = vpack.c.bf16 %v224_v24, %v222_v23 }
  0x84   :  { %393 = vmatprep.subr.bf16.mxu0 %v277_v40  ;;  %v558_v40 = vpack.c.bf16 %v514_v30, %v512_v29  ;;  %610 = vmatprep.subr.bf16.mxu1 %v559_v28  ;;  %v284_v47 = vpack.c.bf16 %v204_v38, %v202_v37  ;;  %v287_v48 = vpack.c.bf16 %v209_v41, %v207_v39  ;;  %v226_v29 = vld [vmem:[#allocation5 + $0x3a0] sm:$0xff]  ;;  %v228_v30 = vld [vmem:[#allocation5 + $0x3b0] sm:$0xff]  ;;  %v235_v37 = vld [vmem:[#allocation5 + $0x3e8] sm:$0xff] }
  0x85   :  { %v297_v28 = vpack.c.bf16 %v229_v26, %v227_v25  ;;  %v296_v33 = vpack.c.bf16 %v228_v30, %v226_v29  ;;  %v237_v38 = vld [vmem:[#allocation5 + $0x3f8] sm:$0xff]  ;;  %v234_v41 = vld [vmem:[#allocation5 + $0x3e0] sm:$0xff] }
  0x86   :  { %611 = vmatpush1.bf16.msra.mxu1 %v558_v40  ;;  %v301_v40 = vpack.c.bf16 %v237_v38, %v235_v37 }
  0x87   :  { %394 = vmatpush1.bf16.msra.mxu0 %v276_v52  ;;  %v560_v52 = vpack.c.bf16 %v518_v44, %v516_v43  ;;  %612 = vmatprep.subr.bf16.mxu1 %v561_v42  ;;  %v236_v42 = vld [vmem:[#allocation5 + $0x3f0] sm:$0xff] }
  0x88   :  { %395 = vmatprep.subr.bf16.mxu0 %v279_v56  ;;  %v522_v56 = vld [vmem:[#allocation7 + $0x170] sm:$0xff]  ;;  %v300_v43 = vpack.c.bf16 %v236_v42, %v234_v41 }
  0x89   :  { %v562_v0 = vpack.c.bf16 %v522_v56, %v520_v55  ;;  %v64_v44 = vld [vmem:[#allocation2 + $0x10] sm:$0xff] }
  0x8a   :  { %367 = vmatmul.mubr.bf16.gmra.mrb[8].mxu0 %v102_v1  ;;  %613 = vmatpush1.bf16.msra.mxu1 %v560_v52  ;;  %v217_v1 = vld [vmem:[#allocation5 + $0x358] sm:$0xff]  ;;  %v80_v56 = vld [vmem:[#allocation2 + $0x90] sm:$0xff] }
  0x8b   :  { %396 = vmatpush1.bf16.msra.mxu0 %v278_v4  ;;  %376 = vmatprep.mubr.bf16.mxu0 %v107_v5  ;;  %v526_v4 = vld [vmem:[#allocation7 + $0x190] sm:$0xff]  ;;  %v529_v5 = vld [vmem:[#allocation7 + $0x1a8] sm:$0xff]  ;;  %v291_v8 = vpack.c.bf16 %v217_v1, %v215_v63  ;;  %v81_v52 = vld [vmem:[#allocation2 + $0x98] sm:$0xff] }
  0x8c   :  { %397 = vmatprep.subr.bf16.mxu0 %v281_v6  ;;  %614 = vmatprep.subr.bf16.mxu1 %v563_v54  ;;  %v531_v6 = vld [vmem:[#allocation7 + $0x1b8] sm:$0xff]  ;;  %v564_v11 = vpack.c.bf16 %v526_v4, %v524_v3  ;;  %v100_v54 = vpack.c.bf16 %v76_v51, %v72_v50  ;;  %v105_v55 = vpack.c.bf16 %v85_v53, %v81_v52  ;;  %v92_v63 = vld [vmem:[#allocation2 + $0xf0] sm:$0xff]  ;;  %v528_v1 = vld [vmem:[#allocation7 + $0x1a0] sm:$0xff] }
  0x8d   :  { %v567_v14 = vpack.c.bf16 %v531_v6, %v529_v5  ;;  %v533_v4 = vld [vmem:[#allocation7 + $0x1c8] sm:$0xff]  ;;  %v535_v5 = vld [vmem:[#allocation7 + $0x1d8] sm:$0xff] }
  0x8e   :  { %615 = vmatpush1.bf16.msra.mxu1 %v562_v0  ;;  %v108_v0 = vpack.c.bf16 %v92_v63, %v88_v62  ;;  %v569_v6 = vpack.c.bf16 %v535_v5, %v533_v4 }
  0x8f   :  { %398 = vmatpush1.bf16.msra.mxu0 %v280_v18  ;;  %616 = vmatprep.subr.bf16.mxu1 %v565_v2  ;;  %v220_v18 = vld [vmem:[#allocation5 + $0x370] sm:$0xff] }
  0x90   :  { %399 = vmatprep.subr.bf16.mxu0 %v283_v22  ;;  %v292_v21 = vpack.c.bf16 %v220_v18, %v218_v17  ;;  %v295_v22 = vpack.c.bf16 %v225_v20, %v223_v19  ;;  %v530_v2 = vld [vmem:[#allocation7 + $0x1b0] sm:$0xff]  ;;  %v302_v19 = vld [vmem:[%s948_s2] sm:$0x3] }
  0x91   :  { %v566_v3 = vpack.c.bf16 %v530_v2, %v528_v1 }
  0x92   :  { %377 = vmatmul.mubr.bf16.gmra.mrb[12].mxu0 %v106_v31  ;;  %617 = vmatpush1.bf16.msra.mxu1 %v564_v11  ;;  %v231_v31 = vld [vmem:[#allocation5 + $0x3c8] sm:$0xff]  ;;  %v539_v11 = vld [vmem:[#allocation7 + $0x1f8] sm:$0xff] }
  0x93   :  { %400 = vmatpush1.bf16.msra.mxu0 %v282_v34  ;;  %419 = vmatprep.mubr.bf16.mxu0 %v97_v35  ;;  %v299_v34 = vpack.c.bf16 %v233_v32, %v231_v31  ;;  %v230_v35 = vld [vmem:[#allocation5 + $0x3c0] sm:$0xff]  ;;  %v571_v12 = vpack.c.bf16 %v539_v11, %v537_v10 }
  0x94   :  { %401 = vmatprep.subr.bf16.mxu0 %v285_v36  ;;  %618 = vmatprep.subr.bf16.mxu1 %v567_v14  ;;  %v232_v36 = vld [vmem:[#allocation5 + $0x3d0] sm:$0xff] }
  0x95   :  { %v298_v39 = vpack.c.bf16 %v232_v36, %v230_v35  ;;  %v538_v14 = vld [vmem:[#allocation7 + $0x1f0] sm:$0xff] }
  0x96   :  { %619 = vmatpush1.bf16.msra.mxu1 %v566_v3 }
  0x97   :  { %402 = vmatpush1.bf16.msra.mxu0 %v284_v47  ;;  %v77_v47 = vld [vmem:[#allocation2 + $0x78] sm:$0xff]  ;;  %620 = vmatprep.subr.bf16.mxu1 %v569_v6 }
  0x98   :  { %403 = vmatprep.subr.bf16.mxu0 %v287_v48  ;;  %v96_v48 = vpack.c.bf16 %v68_v45, %v64_v44  ;;  %v101_v49 = vpack.c.bf16 %v77_v47, %v73_v46 }
  0x9b   :  { %404 = vmatpush1.bf16.msra.mxu0 %v286_v59  ;;  %v93_v59 = vld [vmem:[#allocation2 + $0xf8] sm:$0xff] }
  0x9c   :  { %405 = vmatprep.subr.bf16.mxu0 %v289_v60  ;;  %v104_v60 = vpack.c.bf16 %v84_v57, %v80_v56  ;;  %v109_v61 = vpack.c.bf16 %v93_v59, %v89_v58 }
  0x9f   :  { %406 = vmatpush1.bf16.msra.mxu0 %v288_v7  ;;  %v532_v7 = vld [vmem:[#allocation7 + $0x1c0] sm:$0xff] }
  0xa0   :  { %407 = vmatprep.subr.bf16.mxu0 %v291_v8  ;;  %v534_v8 = vld [vmem:[#allocation7 + $0x1d0] sm:$0xff] }
  0xa1   :  { %v568_v9 = vpack.c.bf16 %v534_v8, %v532_v7 }
  0xa3   :  { %408 = vmatpush1.bf16.msra.mxu0 %v290_v15  ;;  %621 = vmatpush1.bf16.msra.mxu1 %v568_v9  ;;  %v570_v15 = vpack.c.bf16 %v538_v14, %v536_v13 }
  0xa4   :  { %409 = vmatprep.subr.bf16.mxu0 %v293_v16  ;;  %622 = vmatprep.subr.bf16.mxu1 %v571_v12  ;;  %v304_v16 = vlaneseq }
  0xa6   :  { %v913_v17 = vshrl.u32 %v304_v16, 7 }
  0xa7   :  { %410 = vmatpush1.bf16.msra.mxu0 %v292_v21  ;;  %623 = vmatpush1.bf16.msra.mxu1 %v570_v15  ;;  %v580_v15 = vld [vmem:[%s950_s4] sm:$0x3]  ;;  %s840_s4 = smov [#allocation8]  }
  0xa8   :  { %411 = vmatprep.subr.bf16.mxu0 %v295_v22  ;;  %v306_v18 = vsub.s32 0, %v913_v17  ;;  %v310_v20 = vsub.s32 1, %v913_v17  ;;  %s686_s10 = sshll.u32 %s840_s4, 4  ;;  %s687_s10 = int_to_ptr.vmem [resolvable:$true] %s686_s10 }
  0xa9   :  { %s805_s11 = scalar_lea.vmem %s687_s10, 2048  ;;  %p810_p11 = scmp.lt.s32.totalorder %s687_s10, %s687_s10 }
  0xaa   :  { %v307_v21 = vrot.slane %v302_v19, %v306_v18  ;;  %v311_v22 = vrot.slane %v302_v19, %v310_v20  ;;  %v585_v16 = vrot.slane %v580_v15, %v306_v18  ;;  %v589_v19 = vrot.slane %v580_v15, %v310_v20  ;;  %p806_p10 = scmp.ne.s32.totalorder %s687_s10, %s805_s11  ;;  %p811_p12 = scmp.lt.s32.totalorder %s805_s11, %s805_s11 }
  0xab   :  { %412 = vmatpush1.bf16.msra.mxu0 %v294_v27 }
  0xac   :  { %413 = vmatprep.subr.bf16.mxu0 %v297_v28  ;;  %p812_p13 = por %p811_p12, %p810_p11 }
  0xae   :  { %p813_p0 = pnand %p812_p13, %p806_p10 }
  0xaf   :  { %414 = vmatpush1.bf16.msra.mxu0 %v296_v33 }
  0xb0   :  { %415 = vmatprep.subr.bf16.mxu0 %v299_v34 }
  0xb3   :  { %416 = vmatpush1.bf16.msra.mxu0 %v298_v39 }
  0xb4   :  { %417 = vmatprep.subr.bf16.mxu0 %v301_v40 }
  0xb7   :  { %418 = vmatpush1.bf16.msra.mxu0 %v300_v43 }
  0xba   :  { %420 = vmatmul.mubr.bf16.vlgmr.msra.gmra.mrb[0].mxu0 %v96_v48 }
  0xbb   :  { %429 = vmatprep.mubr.bf16.mxu0 %v101_v49 }
  0xc2   :  { %430 = vmatmul.mubr.bf16.gmra.mrb[4].mxu0 %v100_v54 }
  0xc3   :  { %439 = vmatprep.mubr.bf16.mxu0 %v105_v55 }
  0xca   :  { %440 = vmatmul.mubr.bf16.gmra.mrb[8].mxu0 %v104_v60 }
  0xcb   :  { %449 = vmatprep.mubr.bf16.mxu0 %v109_v61 }
  0xd2   :  { %450 = vmatmul.mubr.bf16.gmra.mrb[12].mxu0 %v108_v0 }
 0x18d   :  { %v421_v23 = vpop.f32.mrb[0].mxu0 }
 0x18e   :  { %v699_v24 = vadd.f32 %v421_v23, %v307_v21  ;;  %v423_v25 = vpop.f32.mrb[1].mxu0 }
 0x18f   :  { %v700_v26 = vadd.f32 %v423_v25, %v311_v22  ;;  %v425_v27 = vpop.f32.mrb[2].mxu0 }
 0x190   :  { %v701_v28 = vadd.f32 %v425_v27, %v307_v21  ;;  %v427_v29 = vpop.f32.mrb[3].mxu0  ;;  %v460_v31 = vmax.f32 %v699_v24, 0.0 }
 0x191   :  { %v702_v30 = vadd.f32 %v427_v29, %v311_v22  ;;  %v461_v33 = vmax.f32 %v700_v26, 0.0 }
 0x192   :  { %v462_v32 = vmax.f32 %v701_v28, 0.0 }
 0x193   :  { %v463_v34 = vmax.f32 %v702_v30, 0.0 }
 0x194   :  { %v572_v35 = vpack.c.bf16 %v462_v32, %v460_v31 }
 0x195   :  { %v431_v36 = vpop.f32.mrb[4].mxu0  ;;  %v573_v37 = vpack.c.bf16 %v463_v34, %v461_v33 }
 0x196   :  { %v703_v38 = vadd.f32 %v431_v36, %v307_v21  ;;  %v433_v39 = vpop.f32.mrb[5].mxu0 }
 0x197   :  { %v704_v40 = vadd.f32 %v433_v39, %v311_v22  ;;  %v435_v41 = vpop.f32.mrb[6].mxu0  ;;  %624 = vmatprep.mubr.bf16.mxu1 %v573_v37 }
 0x198   :  { %v705_v42 = vadd.f32 %v435_v41, %v307_v21  ;;  %v437_v43 = vpop.f32.mrb[7].mxu0  ;;  %625 = vmatmul.mubr.bf16.vlgmr.msra.gmra.mrb[0].mxu1 %v572_v35  ;;  %v464_v45 = vmax.f32 %v703_v38, 0.0 }
 0x199   :  { %v706_v44 = vadd.f32 %v437_v43, %v311_v22  ;;  %v465_v47 = vmax.f32 %v704_v40, 0.0 }
 0x19a   :  { %v466_v46 = vmax.f32 %v705_v42, 0.0 }
 0x19b   :  { %v467_v48 = vmax.f32 %v706_v44, 0.0 }
 0x19c   :  { %v574_v49 = vpack.c.bf16 %v466_v46, %v464_v45 }
 0x19d   :  { %v575_v50 = vpack.c.bf16 %v467_v48, %v465_v47  ;;  %v441_v51 = vpop.f32.mrb[8].mxu0 }
 0x19e   :  { %v707_v52 = vadd.f32 %v441_v51, %v307_v21  ;;  %v443_v53 = vpop.f32.mrb[9].mxu0 }
 0x19f   :  { %v708_v54 = vadd.f32 %v443_v53, %v311_v22  ;;  %v445_v55 = vpop.f32.mrb[10].mxu0  ;;  %634 = vmatprep.mubr.bf16.mxu1 %v575_v50 }
 0x1a0   :  { %v709_v56 = vadd.f32 %v445_v55, %v307_v21  ;;  %v447_v57 = vpop.f32.mrb[11].mxu0  ;;  %635 = vmatmul.mubr.bf16.gmra.mrb[4].mxu1 %v574_v49  ;;  %v468_v59 = vmax.f32 %v707_v52, 0.0 }
 0x1a1   :  { %v710_v58 = vadd.f32 %v447_v57, %v311_v22  ;;  %v469_v61 = vmax.f32 %v708_v54, 0.0 }
 0x1a2   :  { %v470_v60 = vmax.f32 %v709_v56, 0.0 }
 0x1a3   :  { %v471_v62 = vmax.f32 %v710_v58, 0.0 }
 0x1a4   :  { %v576_v63 = vpack.c.bf16 %v470_v60, %v468_v59 }
 0x1a5   :  { %v577_v0 = vpack.c.bf16 %v471_v62, %v469_v61  ;;  %v451_v1 = vpop.f32.mrb[12].mxu0 }
 0x1a6   :  { %v711_v2 = vadd.f32 %v451_v1, %v307_v21  ;;  %v453_v3 = vpop.f32.mrb[13].mxu0 }
 0x1a7   :  { %v712_v4 = vadd.f32 %v453_v3, %v311_v22  ;;  %v455_v5 = vpop.f32.mrb[14].mxu0  ;;  %644 = vmatprep.mubr.bf16.mxu1 %v577_v0 }
 0x1a8   :  { %v713_v6 = vadd.f32 %v455_v5, %v307_v21  ;;  %v457_v7 = vpop.f32.mrb[15].mxu0  ;;  %645 = vmatmul.mubr.bf16.gmra.mrb[8].mxu1 %v576_v63  ;;  %v472_v9 = vmax.f32 %v711_v2, 0.0 }
 0x1a9   :  { %v714_v8 = vadd.f32 %v457_v7, %v311_v22  ;;  %v473_v11 = vmax.f32 %v712_v4, 0.0 }
 0x1aa   :  { %v474_v10 = vmax.f32 %v713_v6, 0.0 }
 0x1ab   :  { %v475_v12 = vmax.f32 %v714_v8, 0.0 }
 0x1ac   :  { %v578_v13 = vpack.c.bf16 %v474_v10, %v472_v9 }
 0x1ad   :  { %v579_v14 = vpack.c.bf16 %v475_v12, %v473_v11 }
 0x1af   :  { %654 = vmatprep.mubr.bf16.mxu1 %v579_v14 }
 0x1b0   :  { %655 = vmatmul.mubr.bf16.gmra.mrb[12].mxu1 %v578_v13 }
 0x26b   :  { %v626_v21 = vpop.f32.mrb[0].mxu1 }
 0x26c   :  { %v627_v22 = vadd.f32 %v626_v21, %v585_v16  ;;  %v628_v23 = vpop.f32.mrb[1].mxu1 }
 0x26d   :  { %v629_v24 = vadd.f32 %v628_v23, %v589_v19  ;;  %v630_v25 = vpop.f32.mrb[2].mxu1 }
 0x26e   :  { %665 = vst [vmem:[#allocation8] sm:$0xff] %v627_v22  ;;  %v631_v26 = vadd.f32 %v630_v25, %v585_v16  ;;  %v632_v27 = vpop.f32.mrb[3].mxu1 }
 0x26f   :  { %666 = vst [vmem:[#allocation8 + $0x8] sm:$0xff] %v629_v24  ;;  %v633_v28 = vadd.f32 %v632_v27, %v589_v19 }
 0x270   :  { %667 = vst [vmem:[#allocation8 + $0x10] sm:$0xff] %v631_v26 }
 0x271   :  { %668 = vst [vmem:[#allocation8 + $0x18] sm:$0xff] %v633_v28 }
 0x273   :  { %v636_v29 = vpop.f32.mrb[4].mxu1 }
 0x274   :  { %v637_v30 = vadd.f32 %v636_v29, %v585_v16  ;;  %v638_v31 = vpop.f32.mrb[5].mxu1 }
 0x275   :  { %v639_v32 = vadd.f32 %v638_v31, %v589_v19  ;;  %v640_v18 = vpop.f32.mrb[6].mxu1 }
 0x276   :  { %669 = vst [vmem:[#allocation8 + $0x20] sm:$0xff] %v637_v30  ;;  %v641_v17 = vadd.f32 %v640_v18, %v585_v16  ;;  %v642_v20 = vpop.f32.mrb[7].mxu1 }
 0x277   :  { %670 = vst [vmem:[#allocation8 + $0x28] sm:$0xff] %v639_v32  ;;  %v643_v33 = vadd.f32 %v642_v20, %v589_v19 }
 0x278   :  { %671 = vst [vmem:[#allocation8 + $0x30] sm:$0xff] %v641_v17 }
 0x279   :  { %672 = vst [vmem:[#allocation8 + $0x38] sm:$0xff] %v643_v33 }
 0x27b   :  { %v646_v34 = vpop.f32.mrb[8].mxu1 }
 0x27c   :  { %v647_v35 = vadd.f32 %v646_v34, %v585_v16  ;;  %v648_v36 = vpop.f32.mrb[9].mxu1 }
 0x27d   :  { %v649_v37 = vadd.f32 %v648_v36, %v589_v19  ;;  %v650_v38 = vpop.f32.mrb[10].mxu1 }
 0x27e   :  { %673 = vst [vmem:[#allocation8 + $0x40] sm:$0xff] %v647_v35  ;;  %v651_v39 = vadd.f32 %v650_v38, %v585_v16  ;;  %v652_v40 = vpop.f32.mrb[11].mxu1 }
 0x27f   :  { %674 = vst [vmem:[#allocation8 + $0x48] sm:$0xff] %v649_v37  ;;  %v653_v41 = vadd.f32 %v652_v40, %v589_v19 }
 0x280   :  { %675 = vst [vmem:[#allocation8 + $0x50] sm:$0xff] %v651_v39 }
 0x281   :  { %676 = vst [vmem:[#allocation8 + $0x58] sm:$0xff] %v653_v41 }
 0x283   :  { %v656_v42 = vpop.f32.mrb[12].mxu1 }
 0x284   :  { %v657_v43 = vadd.f32 %v656_v42, %v585_v16  ;;  %v658_v44 = vpop.f32.mrb[13].mxu1 }
 0x285   :  { %v659_v45 = vadd.f32 %v658_v44, %v589_v19  ;;  %v660_v46 = vpop.f32.mrb[14].mxu1 }
 0x286   :  { %677 = vst [vmem:[#allocation8 + $0x60] sm:$0xff] %v657_v43  ;;  %v661_v47 = vadd.f32 %v660_v46, %v585_v16  ;;  %v662_v48 = vpop.f32.mrb[15].mxu1 }
 0x287   :  { %678 = vst [vmem:[#allocation8 + $0x68] sm:$0xff] %v659_v45  ;;  %v663_v49 = vadd.f32 %v662_v48, %v589_v19 }
 0x288   :  { %679 = vst [vmem:[#allocation8 + $0x70] sm:$0xff] %v661_v47 }
 0x289   :  { %680 = vst [vmem:[#allocation8 + $0x78] sm:$0xff] %v663_v49 }
 0x28a   :  { %816 = shalt.err (!%p813_p0)
}
 0x28b   :  { %s817_s14 = scalar_lea.hbm %s951_s5, 2048 }
 0x28c   :  { %p818_p1 = scmp.ne.s32.totalorder %s951_s5, %s817_s14  ;;  %p821_p2 = scmp.lt.u32.totalorder %s817_s14, %s951_s5 }
 0x28e   :  { %p823_p3 = pnand %p821_p2, %p818_p1 }
 0x290   :  { %826 = shalt.err (!%p823_p3)
}
 0x291   :  { %692 = dma.vmem_to_hbm [thread:$0]  %s687_s10, 2048, %s951_s5, [#allocation4], %s834_s28, %s834_s28, %s835_s29  }
 0x292   :  { %831 = dma.done.wait [#allocation4], 2048  }
 0x293   :  { %832 = vsyncadd [#allocation4], 4294965248 }
 0x294   :  { %696 = vsyncpa [#allocation3], 1 }
 0x295   :  { %697 = vsyncpa [#allocation6], 1 }
 0x296   :  { %698 = vsyncpa [#allocation4], 1 }

// kernel: tpu_custom_call.1
= control target key start
LH: loop header
LB: loop body
LE: loop exit
PB: predicated region body
PF: predicated region fallthrough
CT: control target
= control target key end

     0   :  { %10 = vsyncpa [#allocation3], 0  ;;  %s946_s0 = inlined_call_operand.hbm [shape: f32[64,512], index: 0, kind: input, shape index: {}]   ;;  %s947_s1 = inlined_call_operand.hbm [shape: f32[512,256], index: 1, kind: input, shape index: {}]   ;;  %s948_s2 = inlined_call_operand.vmem [shape: f32[1,256], index: 2, kind: input, shape index: {}]   ;;  %s949_s3 = inlined_call_operand.hbm [shape: f32[256,256], index: 3, kind: input, shape index: {}]   ;;  %s950_s4 = inlined_call_operand.vmem [shape: f32[1,256], index: 4, kind: input, shape index: {}]   ;;  %s951_s5 = inlined_call_operand.hbm [shape: f32[64,256], index: 5, kind: output, shape index: {}]  }
   0x1   :  { %11 = vsyncpa [#allocation6], 0 }
   0x2   :  { %12 = vsyncpa [#allocation4], 0  ;;  %s833_s18 = smov [#allocation5]   ;;  %s739_s22 = scalar_lea.hbm %s947_s1, 16384 }
   0x3   :  { %s30_s19 = sshll.u32 %s833_s18, 4  ;;  %p740_p0 = scmp.ne.s32.totalorder %s947_s1, %s739_s22  ;;  %s31_s19 = int_to_ptr.vmem [resolvable:$true] %s30_s19 }
   0x4   :  { %p743_p1 = scmp.lt.u32.totalorder %s739_s22, %s947_s1 }
   0x6   :  { %p745_p2 = pnand %p743_p1, %p740_p0 }
   0x8   :  { %748 = shalt.err (!%p745_p2)
}
   0x9   :  { %s749_s27 = scalar_lea.vmem %s31_s19, 16384  ;;  %p754_p4 = scmp.lt.s32.totalorder %s31_s19, %s31_s19 }
   0xa   :  { %p750_p3 = scmp.ne.s32.totalorder %s31_s19, %s749_s27  ;;  %p755_p5 = scmp.lt.s32.totalorder %s749_s27, %s749_s27 }
   0xc   :  { %p756_p6 = por %p755_p5, %p754_p4 }
   0xe   :  { %p757_p7 = pnand %p756_p6, %p750_p3 }
  0x10   :  { %760 = shalt.err (!%p757_p7)
}
  0x11   :  { %s834_s28 = smov 256   ;;  %s835_s29 = smov 16  }
  0x12   :  { %36 = dma.hbm_to_vmem [thread:$0]  %s947_s1, 16384, %s31_s19, [#allocation6], %s834_s28, %s834_s28, %s835_s29  }
  0x13   :  { %s836_s7 = smov [#allocation2]   ;;  %s761_s11 = scalar_lea.hbm %s946_s0, 4096 }
  0x14   :  { %s18_s8 = sshll.u32 %s836_s7, 4  ;;  %p762_p8 = scmp.ne.s32.totalorder %s946_s0, %s761_s11  ;;  %s19_s8 = int_to_ptr.vmem [resolvable:$true] %s18_s8 }
  0x15   :  { %p765_p9 = scmp.lt.u32.totalorder %s761_s11, %s946_s0 }
  0x17   :  { %p767_p10 = pnand %p765_p9, %p762_p8 }
  0x19   :  { %770 = shalt.err (!%p767_p10)
}
  0x1a   :  { %s771_s16 = scalar_lea.vmem %s19_s8, 4096  ;;  %p776_p12 = scmp.lt.s32.totalorder %s19_s8, %s19_s8 }
  0x1b   :  { %p772_p11 = scmp.ne.s32.totalorder %s19_s8, %s771_s16  ;;  %p777_p13 = scmp.lt.s32.totalorder %s771_s16, %s771_s16 }
  0x1d   :  { %p778_p0 = por %p777_p13, %p776_p12 }
  0x1f   :  { %p779_p1 = pnand %p778_p0, %p772_p11 }
  0x21   :  { %782 = shalt.err (!%p779_p1)
}
  0x22   :  { %s837_s1 = smov 512   ;;  %s838_s17 = smov 32  }
  0x23   :  { %24 = dma.hbm_to_vmem [thread:$0]  %s946_s0, 4096, %s19_s8, [#allocation3], %s837_s1, %s837_s1, %s838_s17  }
  0x24   :  { %s839_s20 = smov [#allocation7]   ;;  %s783_s24 = scalar_lea.hbm %s949_s3, 8192 }
  0x25   :  { %s44_s21 = sshll.u32 %s839_s20, 4  ;;  %p784_p2 = scmp.ne.s32.totalorder %s949_s3, %s783_s24  ;;  %s45_s21 = int_to_ptr.vmem [resolvable:$true] %s44_s21 }
  0x26   :  { %p787_p3 = scmp.lt.u32.totalorder %s783_s24, %s949_s3 }
  0x28   :  { %p789_p4 = pnand %p787_p3, %p784_p2 }
  0x2a   :  { %792 = shalt.err (!%p789_p4)
}
  0x2b   :  { %s793_s6 = scalar_lea.vmem %s45_s21, 8192  ;;  %p798_p6 = scmp.lt.s32.totalorder %s45_s21, %s45_s21 }
  0x2c   :  { %p794_p5 = scmp.ne.s32.totalorder %s45_s21, %s793_s6  ;;  %p799_p7 = scmp.lt.s32.totalorder %s793_s6, %s793_s6 }
  0x2e   :  { %p800_p8 = por %p799_p7, %p798_p6 }
  0x30   :  { %p801_p9 = pnand %p800_p8, %p794_p5 }
  0x32   :  { %804 = shalt.err (!%p801_p9)
}
  0x33   :  { %50 = dma.hbm_to_vmem [thread:$0]  %s949_s3, 8192, %s45_s21, [#allocation6], %s834_s28, %s834_s28, %s835_s29  }
  0x34   :  { %827 = dma.done.wait [#allocation3], 4096  }
  0x35   :  { %828 = vsyncadd [#allocation3], 4294963200 }
  0x36   :  { %829 = dma.done.wait [#allocation6], 24576  }
  0x37   :  { %830 = vsyncadd [#allocation6], 4294942720  ;;  %v111_v0 = vld [vmem:[#allocation5 + $0x8] sm:$0xff]  ;;  %v113_v1 = vld [vmem:[#allocation5 + $0x18] sm:$0xff] }
  0x38   :  { %v110_v2 = vld [vmem:[#allocation5] sm:$0xff]  ;;  %v239_v3 = vpack.c.bf16 %v113_v1, %v111_v0  ;;  %v112_v4 = vld [vmem:[#allocation5 + $0x10] sm:$0xff]  ;;  %v115_v5 = vld [vmem:[#allocation5 + $0x28] sm:$0xff] }
  0x39   :  { %v117_v6 = vld [vmem:[#allocation5 + $0x38] sm:$0xff]  ;;  %v238_v7 = vpack.c.bf16 %v112_v4, %v110_v2  ;;  %v114_v9 = vld [vmem:[#allocation5 + $0x20] sm:$0xff]  ;;  %v116_v10 = vld [vmem:[#allocation5 + $0x30] sm:$0xff] }
  0x3a   :  { %v241_v8 = vpack.c.bf16 %v117_v6, %v115_v5  ;;  %v119_v11 = vld [vmem:[#allocation5 + $0x48] sm:$0xff]  ;;  %314 = vmatprep.subr.bf16.mxu0 %v239_v3  ;;  %v121_v12 = vld [vmem:[#allocation5 + $0x58] sm:$0xff]  ;;  %v240_v13 = vpack.c.bf16 %v116_v10, %v114_v9  ;;  %v118_v15 = vld [vmem:[#allocation5 + $0x40] sm:$0xff] }
  0x3b   :  { %315 = vmatpush1.bf16.msra.mxu0 %v238_v7  ;;  %v243_v14 = vpack.c.bf16 %v121_v12, %v119_v11  ;;  %v120_v16 = vld [vmem:[#allocation5 + $0x50] sm:$0xff]  ;;  %v123_v17 = vld [vmem:[#allocation5 + $0x68] sm:$0xff]  ;;  %v125_v18 = vld [vmem:[#allocation5 + $0x78] sm:$0xff] }
  0x3c   :  { %316 = vmatprep.subr.bf16.mxu0 %v241_v8  ;;  %v242_v19 = vpack.c.bf16 %v120_v16, %v118_v15  ;;  %v245_v20 = vpack.c.bf16 %v125_v18, %v123_v17  ;;  %v122_v21 = vld [vmem:[#allocation5 + $0x60] sm:$0xff]  ;;  %v124_v22 = vld [vmem:[#allocation5 + $0x70] sm:$0xff]  ;;  %v127_v23 = vld [vmem:[#allocation5 + $0x88] sm:$0xff] }
  0x3d   :  { %v129_v24 = vld [vmem:[#allocation5 + $0x98] sm:$0xff]  ;;  %v244_v25 = vpack.c.bf16 %v124_v22, %v122_v21  ;;  %v126_v27 = vld [vmem:[#allocation5 + $0x80] sm:$0xff]  ;;  %v128_v28 = vld [vmem:[#allocation5 + $0x90] sm:$0xff] }
  0x3e   :  { %v247_v26 = vpack.c.bf16 %v129_v24, %v127_v23  ;;  %v131_v29 = vld [vmem:[#allocation5 + $0xa8] sm:$0xff]  ;;  %v133_v30 = vld [vmem:[#allocation5 + $0xb8] sm:$0xff]  ;;  %v246_v31 = vpack.c.bf16 %v128_v28, %v126_v27  ;;  %v130_v33 = vld [vmem:[#allocation5 + $0xa0] sm:$0xff] }
  0x3f   :  { %317 = vmatpush1.bf16.msra.mxu0 %v240_v13  ;;  %v249_v32 = vpack.c.bf16 %v133_v30, %v131_v29  ;;  %v132_v34 = vld [vmem:[#allocation5 + $0xb0] sm:$0xff]  ;;  %v135_v35 = vld [vmem:[#allocation5 + $0xc8] sm:$0xff]  ;;  %v137_v36 = vld [vmem:[#allocation5 + $0xd8] sm:$0xff] }
  0x40   :  { %318 = vmatprep.subr.bf16.mxu0 %v243_v14  ;;  %v248_v37 = vpack.c.bf16 %v132_v34, %v130_v33  ;;  %v134_v38 = vld [vmem:[#allocation5 + $0xc0] sm:$0xff]  ;;  %v251_v39 = vpack.c.bf16 %v137_v36, %v135_v35  ;;  %v136_v40 = vld [vmem:[#allocation5 + $0xd0] sm:$0xff]  ;;  %v63_v41 = vld [vmem:[#allocation2 + $0x8] sm:$0xff] }
  0x41   :  { %v67_v42 = vld [vmem:[#allocation2 + $0x28] sm:$0xff]  ;;  %v141_v44 = vld [vmem:[#allocation5 + $0xf8] sm:$0xff]  ;;  %v250_v46 = vpack.c.bf16 %v136_v40, %v134_v38  ;;  %v138_v48 = vld [vmem:[#allocation5 + $0xe0] sm:$0xff] }
  0x42   :  { %v139_v43 = vld [vmem:[#allocation5 + $0xe8] sm:$0xff]  ;;  %v95_v45 = vpack.c.bf16 %v67_v42, %v63_v41  ;;  %v140_v49 = vld [vmem:[#allocation5 + $0xf0] sm:$0xff]  ;;  %v145_v51 = vld [vmem:[#allocation5 + $0x118] sm:$0xff] }
  0x43   :  { %319 = vmatpush1.bf16.msra.mxu0 %v242_v19  ;;  %v253_v47 = vpack.c.bf16 %v141_v44, %v139_v43  ;;  %v143_v50 = vld [vmem:[#allocation5 + $0x108] sm:$0xff]  ;;  %v252_v52 = vpack.c.bf16 %v140_v49, %v138_v48  ;;  %v142_v54 = vld [vmem:[#allocation5 + $0x100] sm:$0xff]  ;;  %v144_v55 = vld [vmem:[#allocation5 + $0x110] sm:$0xff] }
  0x44   :  { %320 = vmatprep.subr.bf16.mxu0 %v245_v20  ;;  %346 = vmatprep.mubr.bf16.mxu0 %v95_v45  ;;  %v255_v53 = vpack.c.bf16 %v145_v51, %v143_v50  ;;  %v147_v56 = vld [vmem:[#allocation5 + $0x128] sm:$0xff]  ;;  %v149_v57 = vld [vmem:[#allocation5 + $0x138] sm:$0xff]  ;;  %v254_v58 = vpack.c.bf16 %v144_v55, %v142_v54  ;;  %v146_v60 = vld [vmem:[#allocation5 + $0x120] sm:$0xff] }
  0x45   :  { %v257_v59 = vpack.c.bf16 %v149_v57, %v147_v56  ;;  %v148_v61 = vld [vmem:[#allocation5 + $0x130] sm:$0xff]  ;;  %v151_v62 = vld [vmem:[#allocation5 + $0x148] sm:$0xff]  ;;  %v153_v63 = vld [vmem:[#allocation5 + $0x158] sm:$0xff] }
  0x46   :  { %v256_v0 = vpack.c.bf16 %v148_v61, %v146_v60  ;;  %v259_v1 = vpack.c.bf16 %v153_v63, %v151_v62  ;;  %v150_v2 = vld [vmem:[#allocation5 + $0x140] sm:$0xff]  ;;  %v152_v3 = vld [vmem:[#allocation5 + $0x150] sm:$0xff]  ;;  %v155_v4 = vld [vmem:[#allocation5 + $0x168] sm:$0xff] }
  0x47   :  { %321 = vmatpush1.bf16.msra.mxu0 %v244_v25  ;;  %v157_v5 = vld [vmem:[#allocation5 + $0x178] sm:$0xff]  ;;  %v258_v6 = vpack.c.bf16 %v152_v3, %v150_v2  ;;  %v154_v8 = vld [vmem:[#allocation5 + $0x160] sm:$0xff]  ;;  %v156_v9 = vld [vmem:[#allocation5 + $0x170] sm:$0xff] }
  0x48   :  { %322 = vmatprep.subr.bf16.mxu0 %v247_v26  ;;  %v261_v7 = vpack.c.bf16 %v157_v5, %v155_v4  ;;  %v159_v10 = vld [vmem:[#allocation5 + $0x188] sm:$0xff]  ;;  %v161_v11 = vld [vmem:[#allocation5 + $0x198] sm:$0xff]  ;;  %v260_v12 = vpack.c.bf16 %v156_v9, %v154_v8  ;;  %v158_v14 = vld [vmem:[#allocation5 + $0x180] sm:$0xff] }
  0x49   :  { %v263_v13 = vpack.c.bf16 %v161_v11, %v159_v10  ;;  %v160_v15 = vld [vmem:[#allocation5 + $0x190] sm:$0xff]  ;;  %v163_v16 = vld [vmem:[#allocation5 + $0x1a8] sm:$0xff]  ;;  %v165_v17 = vld [vmem:[#allocation5 + $0x1b8] sm:$0xff] }
  0x4a   :  { %v262_v18 = vpack.c.bf16 %v160_v15, %v158_v14  ;;  %v265_v19 = vpack.c.bf16 %v165_v17, %v163_v16  ;;  %v162_v20 = vld [vmem:[#allocation5 + $0x1a0] sm:$0xff]  ;;  %v164_v21 = vld [vmem:[#allocation5 + $0x1b0] sm:$0xff]  ;;  %v167_v22 = vld [vmem:[#allocation5 + $0x1c8] sm:$0xff] }
  0x4b   :  { %323 = vmatpush1.bf16.msra.mxu0 %v246_v31  ;;  %v169_v23 = vld [vmem:[#allocation5 + $0x1d8] sm:$0xff]  ;;  %v264_v24 = vpack.c.bf16 %v164_v21, %v162_v20  ;;  %v166_v25 = vld [vmem:[#allocation5 + $0x1c0] sm:$0xff]  ;;  %v168_v26 = vld [vmem:[#allocation5 + $0x1d0] sm:$0xff] }
  0x4c   :  { %324 = vmatprep.subr.bf16.mxu0 %v249_v32  ;;  %v171_v27 = vld [vmem:[#allocation5 + $0x1e8] sm:$0xff]  ;;  %v267_v28 = vpack.c.bf16 %v169_v23, %v167_v22  ;;  %v173_v29 = vld [vmem:[#allocation5 + $0x1f8] sm:$0xff]  ;;  %v476_v33 = vld [vmem:[#allocation7] sm:$0xff]  ;;  %v266_v40 = vpack.c.bf16 %v168_v26, %v166_v25 }
  0x4d   :  { %v477_v30 = vld [vmem:[#allocation7 + $0x8] sm:$0xff]  ;;  %v479_v31 = vld [vmem:[#allocation7 + $0x18] sm:$0xff]  ;;  %v478_v34 = vld [vmem:[#allocation7 + $0x10] sm:$0xff]  ;;  %v269_v44 = vpack.c.bf16 %v173_v29, %v171_v27 }
  0x4e   :  { %v541_v32 = vpack.c.bf16 %v479_v31, %v477_v30  ;;  %v481_v35 = vld [vmem:[#allocation7 + $0x28] sm:$0xff]  ;;  %v540_v36 = vpack.c.bf16 %v478_v34, %v476_v33  ;;  %v480_v38 = vld [vmem:[#allocation7 + $0x20] sm:$0xff]  ;;  %v487_v43 = vld [vmem:[#allocation7 + $0x58] sm:$0xff] }
  0x4f   :  { %325 = vmatpush1.bf16.msra.mxu0 %v248_v37  ;;  %v483_v37 = vld [vmem:[#allocation7 + $0x38] sm:$0xff]  ;;  %v485_v42 = vld [vmem:[#allocation7 + $0x48] sm:$0xff]  ;;  %v170_v45 = vld [vmem:[#allocation5 + $0x1e0] sm:$0xff] }
  0x50   :  { %326 = vmatprep.subr.bf16.mxu0 %v251_v39  ;;  %v482_v39 = vld [vmem:[#allocation7 + $0x30] sm:$0xff]  ;;  %592 = vmatprep.subr.bf16.mxu1 %v541_v32  ;;  %v543_v41 = vpack.c.bf16 %v483_v37, %v481_v35  ;;  %v177_v49 = vld [vmem:[#allocation5 + $0x218] sm:$0xff]  ;;  %v545_v50 = vpack.c.bf16 %v487_v43, %v485_v42  ;;  %v484_v51 = vld [vmem:[#allocation7 + $0x40] sm:$0xff] }
  0x51   :  { %593 = vmatpush1.bf16.msra.mxu1 %v540_v36  ;;  %v542_v48 = vpack.c.bf16 %v482_v39, %v480_v38  ;;  %v489_v54 = vld [vmem:[#allocation7 + $0x68] sm:$0xff]  ;;  %v491_v55 = vld [vmem:[#allocation7 + $0x78] sm:$0xff]  ;;  %v66_v57 = vld [vmem:[#allocation2 + $0x20] sm:$0xff] }
  0x52   :  { %594 = vmatprep.subr.bf16.mxu1 %v543_v41  ;;  %v179_v61 = vld [vmem:[#allocation5 + $0x228] sm:$0xff]  ;;  %v547_v2 = vpack.c.bf16 %v491_v55, %v489_v54  ;;  %v488_v3 = vld [vmem:[#allocation7 + $0x60] sm:$0xff]  ;;  %v490_v4 = vld [vmem:[#allocation7 + $0x70] sm:$0xff] }
  0x53   :  { %327 = vmatpush1.bf16.msra.mxu0 %v250_v46  ;;  %v172_v46 = vld [vmem:[#allocation5 + $0x1f0] sm:$0xff]  ;;  %v71_v62 = vld [vmem:[#allocation2 + $0x48] sm:$0xff]  ;;  %v178_v11 = vld [vmem:[#allocation5 + $0x220] sm:$0xff]  ;;  %v546_v14 = vpack.c.bf16 %v490_v4, %v488_v3 }
  0x54   :  { %328 = vmatprep.subr.bf16.mxu0 %v253_v47  ;;  %v175_v47 = vld [vmem:[#allocation5 + $0x208] sm:$0xff]  ;;  %v268_v56 = vpack.c.bf16 %v172_v46, %v170_v45  ;;  %v185_v15 = vld [vmem:[#allocation5 + $0x258] sm:$0xff]  ;;  %v492_v17 = vld [vmem:[#allocation7 + $0x80] sm:$0xff] }
  0x55   :  { %v271_v60 = vpack.c.bf16 %v177_v49, %v175_v47  ;;  %v75_v63 = vld [vmem:[#allocation2 + $0x68] sm:$0xff]  ;;  %595 = vmatpush1.bf16.msra.mxu1 %v542_v48  ;;  %v499_v21 = vld [vmem:[#allocation7 + $0xb8] sm:$0xff]  ;;  %v184_v23 = vld [vmem:[#allocation5 + $0x250] sm:$0xff] }
  0x56   :  { %596 = vmatprep.subr.bf16.mxu1 %v545_v50  ;;  %v99_v9 = vpack.c.bf16 %v75_v63, %v71_v62  ;;  %v497_v20 = vld [vmem:[#allocation7 + $0xa8] sm:$0xff]  ;;  %v74_v25 = vld [vmem:[#allocation2 + $0x60] sm:$0xff]  ;;  %v189_v31 = vld [vmem:[#allocation5 + $0x278] sm:$0xff] }
  0x57   :  { %329 = vmatpush1.bf16.msra.mxu0 %v252_v52  ;;  %v486_v52 = vld [vmem:[#allocation7 + $0x50] sm:$0xff]  ;;  %v187_v27 = vld [vmem:[#allocation5 + $0x268] sm:$0xff]  ;;  %v551_v32 = vpack.c.bf16 %v499_v21, %v497_v20  ;;  %v496_v33 = vld [vmem:[#allocation7 + $0xa0] sm:$0xff] }
  0x58   :  { %330 = vmatprep.subr.bf16.mxu0 %v255_v53  ;;  %v62_v53 = vld [vmem:[#allocation2] sm:$0xff]  ;;  %v83_v29 = vld [vmem:[#allocation2 + $0xa8] sm:$0xff]  ;;  %v498_v34 = vld [vmem:[#allocation7 + $0xb0] sm:$0xff] }
  0x59   :  { %v94_v5 = vpack.c.bf16 %v66_v57, %v62_v53  ;;  %v501_v36 = vld [vmem:[#allocation7 + $0xc8] sm:$0xff]  ;;  %v503_v37 = vld [vmem:[#allocation7 + $0xd8] sm:$0xff]  ;;  %v186_v41 = vld [vmem:[#allocation5 + $0x260] sm:$0xff] }
  0x5a   :  { %v188_v42 = vld [vmem:[#allocation5 + $0x270] sm:$0xff]  ;;  %v191_v43 = vld [vmem:[#allocation5 + $0x288] sm:$0xff]  ;;  %v193_v45 = vld [vmem:[#allocation5 + $0x298] sm:$0xff]  ;;  %v553_v46 = vpack.c.bf16 %v503_v37, %v501_v36 }
  0x5b   :  { %331 = vmatpush1.bf16.msra.mxu0 %v254_v58  ;;  %v174_v58 = vld [vmem:[#allocation5 + $0x200] sm:$0xff]  ;;  %v502_v48 = vld [vmem:[#allocation7 + $0xd0] sm:$0xff]  ;;  %v505_v50 = vld [vmem:[#allocation7 + $0xe8] sm:$0xff] }
  0x5c   :  { %332 = vmatprep.subr.bf16.mxu0 %v257_v59  ;;  %v176_v59 = vld [vmem:[#allocation5 + $0x210] sm:$0xff]  ;;  %v500_v47 = vld [vmem:[#allocation7 + $0xc0] sm:$0xff]  ;;  %v195_v57 = vld [vmem:[#allocation5 + $0x2a8] sm:$0xff] }
  0x5d   :  { %v270_v8 = vpack.c.bf16 %v176_v59, %v174_v58  ;;  %v190_v49 = vld [vmem:[#allocation5 + $0x280] sm:$0xff]  ;;  %v192_v53 = vld [vmem:[#allocation5 + $0x290] sm:$0xff]  ;;  %v87_v58 = vld [vmem:[#allocation2 + $0xc8] sm:$0xff] }
  0x5e   :  { %v78_v54 = vld [vmem:[#allocation2 + $0x80] sm:$0xff]  ;;  %v91_v59 = vld [vmem:[#allocation2 + $0xe8] sm:$0xff]  ;;  %v511_v3 = vld [vmem:[#allocation7 + $0x118] sm:$0xff]  ;;  %v278_v4 = vpack.c.bf16 %v192_v53, %v190_v49 }
  0x5f   :  { %333 = vmatpush1.bf16.msra.mxu0 %v256_v0  ;;  %v544_v0 = vpack.c.bf16 %v486_v52, %v484_v51  ;;  %v507_v51 = vld [vmem:[#allocation7 + $0xf8] sm:$0xff]  ;;  %v276_v52 = vpack.c.bf16 %v188_v42, %v186_v41  ;;  %v82_v55 = vld [vmem:[#allocation2 + $0xa0] sm:$0xff] }
  0x60   :  { %334 = vmatprep.subr.bf16.mxu0 %v259_v1  ;;  %v181_v1 = vld [vmem:[#allocation5 + $0x238] sm:$0xff]  ;;  %v555_v62 = vpack.c.bf16 %v507_v51, %v505_v50  ;;  %v504_v63 = vld [vmem:[#allocation7 + $0xe0] sm:$0xff]  ;;  %v208_v50 = vld [vmem:[#allocation5 + $0x310] sm:$0xff] }
  0x61   :  { %v273_v10 = vpack.c.bf16 %v181_v1, %v179_v61  ;;  %597 = vmatpush1.bf16.msra.mxu1 %v544_v0  ;;  %v197_v61 = vld [vmem:[#allocation5 + $0x2b8] sm:$0xff]  ;;  %v506_v0 = vld [vmem:[#allocation7 + $0xf0] sm:$0xff]  ;;  %v102_v1 = vpack.c.bf16 %v82_v55, %v78_v54  ;;  %v86_v20 = vld [vmem:[#allocation2 + $0xc0] sm:$0xff] }
  0x62   :  { %598 = vmatprep.subr.bf16.mxu1 %v547_v2  ;;  %v509_v2 = vld [vmem:[#allocation7 + $0x108] sm:$0xff]  ;;  %v90_v21 = vld [vmem:[#allocation2 + $0xe0] sm:$0xff]  ;;  %v209_v41 = vld [vmem:[#allocation5 + $0x318] sm:$0xff] }
  0x63   :  { %335 = vmatpush1.bf16.msra.mxu0 %v258_v6  ;;  %v493_v6 = vld [vmem:[#allocation7 + $0x88] sm:$0xff]  ;;  %v202_v37 = vld [vmem:[#allocation5 + $0x2e0] sm:$0xff]  ;;  %v213_v53 = vld [vmem:[#allocation5 + $0x338] sm:$0xff] }
  0x64   :  { %336 = vmatprep.subr.bf16.mxu0 %v261_v7  ;;  %v495_v7 = vld [vmem:[#allocation7 + $0x98] sm:$0xff]  ;;  %v206_v49 = vld [vmem:[#allocation5 + $0x300] sm:$0xff]  ;;  %v211_v51 = vld [vmem:[#allocation5 + $0x328] sm:$0xff] }
  0x65   :  { %v549_v16 = vpack.c.bf16 %v495_v7, %v493_v6  ;;  %599 = vmatpush1.bf16.msra.mxu1 %v546_v14  ;;  %v281_v6 = vpack.c.bf16 %v197_v61, %v195_v57  ;;  %v194_v7 = vld [vmem:[#allocation5 + $0x2a0] sm:$0xff]  ;;  %v510_v14 = vld [vmem:[#allocation7 + $0x110] sm:$0xff]  ;;  %v525_v57 = vld [vmem:[#allocation7 + $0x188] sm:$0xff] }
  0x66   :  { %v520_v55 = vld [vmem:[#allocation7 + $0x160] sm:$0xff] }
  0x67   :  { %337 = vmatpush1.bf16.msra.mxu0 %v260_v12  ;;  %v180_v12 = vld [vmem:[#allocation5 + $0x230] sm:$0xff]  ;;  %600 = vmatprep.subr.bf16.mxu1 %v549_v16  ;;  %v513_v16 = vld [vmem:[#allocation7 + $0x128] sm:$0xff]  ;;  %v210_v61 = vld [vmem:[#allocation5 + $0x320] sm:$0xff] }
  0x68   :  { %338 = vmatprep.subr.bf16.mxu0 %v263_v13  ;;  %v183_v13 = vld [vmem:[#allocation5 + $0x248] sm:$0xff]  ;;  %v272_v22 = vpack.c.bf16 %v180_v12, %v178_v11  ;;  %v201_v11 = vld [vmem:[#allocation5 + $0x2d8] sm:$0xff]  ;;  %v557_v12 = vpack.c.bf16 %v511_v3, %v509_v2  ;;  %v524_v3 = vld [vmem:[#allocation7 + $0x180] sm:$0xff] }
  0x69   :  { %v275_v26 = vpack.c.bf16 %v185_v15, %v183_v13  ;;  %v508_v13 = vld [vmem:[#allocation7 + $0x100] sm:$0xff] }
  0x6a   :  { %v198_v15 = vld [vmem:[#allocation5 + $0x2c0] sm:$0xff] }
  0x6b   :  { %339 = vmatpush1.bf16.msra.mxu0 %v262_v18  ;;  %v494_v18 = vld [vmem:[#allocation7 + $0x90] sm:$0xff] }
  0x6c   :  { %340 = vmatprep.subr.bf16.mxu0 %v265_v19  ;;  %v182_v19 = vld [vmem:[#allocation5 + $0x240] sm:$0xff]  ;;  %v548_v30 = vpack.c.bf16 %v494_v18, %v492_v17  ;;  %v515_v17 = vld [vmem:[#allocation7 + $0x138] sm:$0xff] }
  0x6d   :  { %v274_v38 = vpack.c.bf16 %v184_v23, %v182_v19  ;;  %v200_v19 = vld [vmem:[#allocation5 + $0x2d0] sm:$0xff]  ;;  %v203_v23 = vld [vmem:[#allocation5 + $0x2e8] sm:$0xff] }
  0x6e   :  { %601 = vmatpush1.bf16.msra.mxu1 %v548_v30  ;;  %v514_v30 = vld [vmem:[#allocation7 + $0x130] sm:$0xff] }
  0x6f   :  { %341 = vmatpush1.bf16.msra.mxu0 %v264_v24  ;;  %v70_v24 = vld [vmem:[#allocation2 + $0x40] sm:$0xff]  ;;  %602 = vmatprep.subr.bf16.mxu1 %v551_v32  ;;  %v517_v32 = vld [vmem:[#allocation7 + $0x148] sm:$0xff] }
  0x70   :  { %342 = vmatprep.subr.bf16.mxu0 %v267_v28  ;;  %v79_v28 = vld [vmem:[#allocation2 + $0x88] sm:$0xff]  ;;  %v98_v35 = vpack.c.bf16 %v74_v25, %v70_v24  ;;  %v65_v24 = vld [vmem:[#allocation2 + $0x18] sm:$0xff] }
  0x71   :  { %v103_v39 = vpack.c.bf16 %v83_v29, %v79_v28  ;;  %v69_v25 = vld [vmem:[#allocation2 + $0x38] sm:$0xff]  ;;  %v559_v28 = vpack.c.bf16 %v515_v17, %v513_v16  ;;  %v512_v29 = vld [vmem:[#allocation7 + $0x120] sm:$0xff] }
  0x72   :  { %v218_v17 = vld [vmem:[#allocation5 + $0x360] sm:$0xff] }
  0x73   :  { %343 = vmatpush1.bf16.msra.mxu0 %v266_v40  ;;  %v277_v40 = vpack.c.bf16 %v189_v31, %v187_v27  ;;  %v205_v27 = vld [vmem:[#allocation5 + $0x2f8] sm:$0xff]  ;;  %v106_v31 = vpack.c.bf16 %v90_v21, %v86_v20 }
  0x74   :  { %344 = vmatprep.subr.bf16.mxu0 %v269_v44  ;;  %v550_v44 = vpack.c.bf16 %v498_v34, %v496_v33  ;;  %v519_v33 = vld [vmem:[#allocation7 + $0x158] sm:$0xff]  ;;  %v282_v34 = vpack.c.bf16 %v200_v19, %v198_v15  ;;  %v285_v36 = vpack.c.bf16 %v205_v27, %v203_v23  ;;  %v223_v19 = vld [vmem:[#allocation5 + $0x388] sm:$0xff]  ;;  %v222_v23 = vld [vmem:[#allocation5 + $0x380] sm:$0xff] }
  0x75   :  { %v561_v42 = vpack.c.bf16 %v519_v33, %v517_v32  ;;  %v225_v20 = vld [vmem:[#allocation5 + $0x398] sm:$0xff] }
  0x76   :  { %603 = vmatpush1.bf16.msra.mxu1 %v550_v44  ;;  %v518_v44 = vld [vmem:[#allocation7 + $0x150] sm:$0xff]  ;;  %v233_v32 = vld [vmem:[#allocation5 + $0x3d8] sm:$0xff] }
  0x77   :  { %345 = vmatpush1.bf16.msra.mxu0 %v268_v56  ;;  %v279_v56 = vpack.c.bf16 %v193_v45, %v191_v43  ;;  %604 = vmatprep.subr.bf16.mxu1 %v553_v46  ;;  %v516_v43 = vld [vmem:[#allocation7 + $0x140] sm:$0xff]  ;;  %v521_v45 = vld [vmem:[#allocation7 + $0x168] sm:$0xff]  ;;  %v523_v46 = vld [vmem:[#allocation7 + $0x178] sm:$0xff] }
  0x78   :  { %387 = vmatprep.subr.bf16.mxu0 %v271_v60  ;;  %v552_v60 = vpack.c.bf16 %v502_v48, %v500_v47  ;;  %v563_v54 = vpack.c.bf16 %v523_v46, %v521_v45  ;;  %v68_v45 = vld [vmem:[#allocation2 + $0x30] sm:$0xff]  ;;  %v73_v46 = vld [vmem:[#allocation2 + $0x58] sm:$0xff] }
  0x7a   :  { %347 = vmatmul.mubr.bf16.vlgmr.msra.gmra.mrb[0].mxu0 %v94_v5  ;;  %v107_v5 = vpack.c.bf16 %v91_v59, %v87_v58  ;;  %605 = vmatpush1.bf16.msra.mxu1 %v552_v60  ;;  %v527_v58 = vld [vmem:[#allocation7 + $0x198] sm:$0xff]  ;;  %v286_v59 = vpack.c.bf16 %v208_v50, %v206_v49  ;;  %v289_v60 = vpack.c.bf16 %v213_v53, %v211_v51  ;;  %v72_v50 = vld [vmem:[#allocation2 + $0x50] sm:$0xff] }
  0x7b   :  { %388 = vmatpush1.bf16.msra.mxu0 %v270_v8  ;;  %356 = vmatprep.mubr.bf16.mxu0 %v99_v9  ;;  %v196_v8 = vld [vmem:[#allocation5 + $0x2b0] sm:$0xff]  ;;  %v199_v9 = vld [vmem:[#allocation5 + $0x2c8] sm:$0xff]  ;;  %v565_v2 = vpack.c.bf16 %v527_v58, %v525_v57  ;;  %v85_v53 = vld [vmem:[#allocation2 + $0xb8] sm:$0xff] }
  0x7c   :  { %389 = vmatprep.subr.bf16.mxu0 %v273_v10  ;;  %v554_v10 = vpack.c.bf16 %v506_v0, %v504_v63  ;;  %606 = vmatprep.subr.bf16.mxu1 %v555_v62  ;;  %v280_v18 = vpack.c.bf16 %v196_v8, %v194_v7  ;;  %v212_v62 = vld [vmem:[#allocation5 + $0x330] sm:$0xff]  ;;  %v215_v63 = vld [vmem:[#allocation5 + $0x348] sm:$0xff]  ;;  %v89_v58 = vld [vmem:[#allocation2 + $0xd8] sm:$0xff] }
  0x7d   :  { %v288_v7 = vpack.c.bf16 %v212_v62, %v210_v61  ;;  %v76_v51 = vld [vmem:[#allocation2 + $0x70] sm:$0xff] }
  0x7e   :  { %607 = vmatpush1.bf16.msra.mxu1 %v554_v10  ;;  %v216_v10 = vld [vmem:[#allocation5 + $0x350] sm:$0xff] }
  0x7f   :  { %390 = vmatpush1.bf16.msra.mxu0 %v272_v22  ;;  %v283_v22 = vpack.c.bf16 %v201_v11, %v199_v9  ;;  %608 = vmatprep.subr.bf16.mxu1 %v557_v12  ;;  %v214_v9 = vld [vmem:[#allocation5 + $0x340] sm:$0xff]  ;;  %v219_v12 = vld [vmem:[#allocation5 + $0x368] sm:$0xff]  ;;  %v84_v57 = vld [vmem:[#allocation2 + $0xb0] sm:$0xff] }
  0x80   :  { %391 = vmatprep.subr.bf16.mxu0 %v275_v26  ;;  %v556_v26 = vpack.c.bf16 %v510_v14, %v508_v13  ;;  %v221_v13 = vld [vmem:[#allocation5 + $0x378] sm:$0xff]  ;;  %v290_v15 = vpack.c.bf16 %v216_v10, %v214_v9  ;;  %v88_v62 = vld [vmem:[#allocation2 + $0xd0] sm:$0xff]  ;;  %v537_v10 = vld [vmem:[#allocation7 + $0x1e8] sm:$0xff] }
  0x81   :  { %v293_v16 = vpack.c.bf16 %v221_v13, %v219_v12  ;;  %v536_v13 = vld [vmem:[#allocation7 + $0x1e0] sm:$0xff] }
  0x82   :  { %357 = vmatmul.mubr.bf16.gmra.mrb[4].mxu0 %v98_v35  ;;  %v97_v35 = vpack.c.bf16 %v69_v25, %v65_v24  ;;  %609 = vmatpush1.bf16.msra.mxu1 %v556_v26  ;;  %v224_v24 = vld [vmem:[#allocation5 + $0x390] sm:$0xff]  ;;  %v227_v25 = vld [vmem:[#allocation5 + $0x3a8] sm:$0xff]  ;;  %v229_v26 = vld [vmem:[#allocation5 + $0x3b8] sm:$0xff] }
  0x83   :  { %392 = vmatpush1.bf16.msra.mxu0 %v274_v38  ;;  %366 = vmatprep.mubr.bf16.mxu0 %v103_v39  ;;  %v204_v38 = vld [vmem:[#allocation5 + $0x2f0] sm:$0xff]  ;;  %v207_v39 = vld [vmem:[#allocation5 + $0x308] sm:$0xff]  ;;  %v294_v27 = vpack.c.bf16 %v224_v24, %v222_v23 }
  0x84   :  { %393 = vmatprep.subr.bf16.mxu0 %v277_v40  ;;  %v558_v40 = vpack.c.bf16 %v514_v30, %v512_v29  ;;  %610 = vmatprep.subr.bf16.mxu1 %v559_v28  ;;  %v284_v47 = vpack.c.bf16 %v204_v38, %v202_v37  ;;  %v287_v48 = vpack.c.bf16 %v209_v41, %v207_v39  ;;  %v226_v29 = vld [vmem:[#allocation5 + $0x3a0] sm:$0xff]  ;;  %v228_v30 = vld [vmem:[#allocation5 + $0x3b0] sm:$0xff]  ;;  %v235_v37 = vld [vmem:[#allocation5 + $0x3e8] sm:$0xff] }
  0x85   :  { %v297_v28 = vpack.c.bf16 %v229_v26, %v227_v25  ;;  %v296_v33 = vpack.c.bf16 %v228_v30, %v226_v29  ;;  %v237_v38 = vld [vmem:[#allocation5 + $0x3f8] sm:$0xff]  ;;  %v234_v41 = vld [vmem:[#allocation5 + $0x3e0] sm:$0xff] }
  0x86   :  { %611 = vmatpush1.bf16.msra.mxu1 %v558_v40  ;;  %v301_v40 = vpack.c.bf16 %v237_v38, %v235_v37 }
  0x87   :  { %394 = vmatpush1.bf16.msra.mxu0 %v276_v52  ;;  %v560_v52 = vpack.c.bf16 %v518_v44, %v516_v43  ;;  %612 = vmatprep.subr.bf16.mxu1 %v561_v42  ;;  %v236_v42 = vld [vmem:[#allocation5 + $0x3f0] sm:$0xff] }
  0x88   :  { %395 = vmatprep.subr.bf16.mxu0 %v279_v56  ;;  %v522_v56 = vld [vmem:[#allocation7 + $0x170] sm:$0xff]  ;;  %v300_v43 = vpack.c.bf16 %v236_v42, %v234_v41 }
  0x89   :  { %v562_v0 = vpack.c.bf16 %v522_v56, %v520_v55  ;;  %v64_v44 = vld [vmem:[#allocation2 + $0x10] sm:$0xff] }
  0x8a   :  { %367 = vmatmul.mubr.bf16.gmra.mrb[8].mxu0 %v102_v1  ;;  %613 = vmatpush1.bf16.msra.mxu1 %v560_v52  ;;  %v217_v1 = vld [vmem:[#allocation5 + $0x358] sm:$0xff]  ;;  %v80_v56 = vld [vmem:[#allocation2 + $0x90] sm:$0xff] }
  0x8b   :  { %396 = vmatpush1.bf16.msra.mxu0 %v278_v4  ;;  %376 = vmatprep.mubr.bf16.mxu0 %v107_v5  ;;  %v526_v4 = vld [vmem:[#allocation7 + $0x190] sm:$0xff]  ;;  %v529_v5 = vld [vmem:[#allocation7 + $0x1a8] sm:$0xff]  ;;  %v291_v8 = vpack.c.bf16 %v217_v1, %v215_v63  ;;  %v81_v52 = vld [vmem:[#allocation2 + $0x98] sm:$0xff] }
  0x8c   :  { %397 = vmatprep.subr.bf16.mxu0 %v281_v6  ;;  %614 = vmatprep.subr.bf16.mxu1 %v563_v54  ;;  %v531_v6 = vld [vmem:[#allocation7 + $0x1b8] sm:$0xff]  ;;  %v564_v11 = vpack.c.bf16 %v526_v4, %v524_v3  ;;  %v100_v54 = vpack.c.bf16 %v76_v51, %v72_v50  ;;  %v105_v55 = vpack.c.bf16 %v85_v53, %v81_v52  ;;  %v92_v63 = vld [vmem:[#allocation2 + $0xf0] sm:$0xff]  ;;  %v528_v1 = vld [vmem:[#allocation7 + $0x1a0] sm:$0xff] }
  0x8d   :  { %v567_v14 = vpack.c.bf16 %v531_v6, %v529_v5  ;;  %v533_v4 = vld [vmem:[#allocation7 + $0x1c8] sm:$0xff]  ;;  %v535_v5 = vld [vmem:[#allocation7 + $0x1d8] sm:$0xff] }
  0x8e   :  { %615 = vmatpush1.bf16.msra.mxu1 %v562_v0  ;;  %v108_v0 = vpack.c.bf16 %v92_v63, %v88_v62  ;;  %v569_v6 = vpack.c.bf16 %v535_v5, %v533_v4 }
  0x8f   :  { %398 = vmatpush1.bf16.msra.mxu0 %v280_v18  ;;  %616 = vmatprep.subr.bf16.mxu1 %v565_v2  ;;  %v220_v18 = vld [vmem:[#allocation5 + $0x370] sm:$0xff] }
  0x90   :  { %399 = vmatprep.subr.bf16.mxu0 %v283_v22  ;;  %v292_v21 = vpack.c.bf16 %v220_v18, %v218_v17  ;;  %v295_v22 = vpack.c.bf16 %v225_v20, %v223_v19  ;;  %v530_v2 = vld [vmem:[#allocation7 + $0x1b0] sm:$0xff]  ;;  %v302_v19 = vld [vmem:[%s948_s2] sm:$0x3] }
  0x91   :  { %v566_v3 = vpack.c.bf16 %v530_v2, %v528_v1 }
  0x92   :  { %377 = vmatmul.mubr.bf16.gmra.mrb[12].mxu0 %v106_v31  ;;  %617 = vmatpush1.bf16.msra.mxu1 %v564_v11  ;;  %v231_v31 = vld [vmem:[#allocation5 + $0x3c8] sm:$0xff]  ;;  %v539_v11 = vld [vmem:[#allocation7 + $0x1f8] sm:$0xff] }
  0x93   :  { %400 = vmatpush1.bf16.msra.mxu0 %v282_v34  ;;  %419 = vmatprep.mubr.bf16.mxu0 %v97_v35  ;;  %v299_v34 = vpack.c.bf16 %v233_v32, %v231_v31  ;;  %v230_v35 = vld [vmem:[#allocation5 + $0x3c0] sm:$0xff]  ;;  %v571_v12 = vpack.c.bf16 %v539_v11, %v537_v10 }
  0x94   :  { %401 = vmatprep.subr.bf16.mxu0 %v285_v36  ;;  %618 = vmatprep.subr.bf16.mxu1 %v567_v14  ;;  %v232_v36 = vld [vmem:[#allocation5 + $0x3d0] sm:$0xff] }
  0x95   :  { %v298_v39 = vpack.c.bf16 %v232_v36, %v230_v35  ;;  %v538_v14 = vld [vmem:[#allocation7 + $0x1f0] sm:$0xff] }
  0x96   :  { %619 = vmatpush1.bf16.msra.mxu1 %v566_v3 }
  0x97   :  { %402 = vmatpush1.bf16.msra.mxu0 %v284_v47  ;;  %v77_v47 = vld [vmem:[#allocation2 + $0x78] sm:$0xff]  ;;  %620 = vmatprep.subr.bf16.mxu1 %v569_v6 }
  0x98   :  { %403 = vmatprep.subr.bf16.mxu0 %v287_v48  ;;  %v96_v48 = vpack.c.bf16 %v68_v45, %v64_v44  ;;  %v101_v49 = vpack.c.bf16 %v77_v47, %v73_v46 }
  0x9b   :  { %404 = vmatpush1.bf16.msra.mxu0 %v286_v59  ;;  %v93_v59 = vld [vmem:[#allocation2 + $0xf8] sm:$0xff] }
  0x9c   :  { %405 = vmatprep.subr.bf16.mxu0 %v289_v60  ;;  %v104_v60 = vpack.c.bf16 %v84_v57, %v80_v56  ;;  %v109_v61 = vpack.c.bf16 %v93_v59, %v89_v58 }
  0x9f   :  { %406 = vmatpush1.bf16.msra.mxu0 %v288_v7  ;;  %v532_v7 = vld [vmem:[#allocation7 + $0x1c0] sm:$0xff] }
  0xa0   :  { %407 = vmatprep.subr.bf16.mxu0 %v291_v8  ;;  %v534_v8 = vld [vmem:[#allocation7 + $0x1d0] sm:$0xff] }
  0xa1   :  { %v568_v9 = vpack.c.bf16 %v534_v8, %v532_v7 }
  0xa3   :  { %408 = vmatpush1.bf16.msra.mxu0 %v290_v15  ;;  %621 = vmatpush1.bf16.msra.mxu1 %v568_v9  ;;  %v570_v15 = vpack.c.bf16 %v538_v14, %v536_v13 }
  0xa4   :  { %409 = vmatprep.subr.bf16.mxu0 %v293_v16  ;;  %622 = vmatprep.subr.bf16.mxu1 %v571_v12  ;;  %v304_v16 = vlaneseq }
  0xa6   :  { %v913_v17 = vshrl.u32 %v304_v16, 7 }
  0xa7   :  { %410 = vmatpush1.bf16.msra.mxu0 %v292_v21  ;;  %623 = vmatpush1.bf16.msra.mxu1 %v570_v15  ;;  %v580_v15 = vld [vmem:[%s950_s4] sm:$0x3]  ;;  %s840_s4 = smov [#allocation8]  }
  0xa8   :  { %411 = vmatprep.subr.bf16.mxu0 %v295_v22  ;;  %v306_v18 = vsub.s32 0, %v913_v17  ;;  %v310_v20 = vsub.s32 1, %v913_v17  ;;  %s686_s10 = sshll.u32 %s840_s4, 4  ;;  %s687_s10 = int_to_ptr.vmem [resolvable:$true] %s686_s10 }
  0xa9   :  { %s805_s11 = scalar_lea.vmem %s687_s10, 2048  ;;  %p810_p11 = scmp.lt.s32.totalorder %s687_s10, %s687_s10 }
  0xaa   :  { %v307_v21 = vrot.slane %v302_v19, %v306_v18  ;;  %v311_v22 = vrot.slane %v302_v19, %v310_v20  ;;  %v585_v16 = vrot.slane %v580_v15, %v306_v18  ;;  %v589_v19 = vrot.slane %v580_v15, %v310_v20  ;;  %p806_p10 = scmp.ne.s32.totalorder %s687_s10, %s805_s11  ;;  %p811_p12 = scmp.lt.s32.totalorder %s805_s11, %s805_s11 }
  0xab   :  { %412 = vmatpush1.bf16.msra.mxu0 %v294_v27 }
  0xac   :  { %413 = vmatprep.subr.bf16.mxu0 %v297_v28  ;;  %p812_p13 = por %p811_p12, %p810_p11 }
  0xae   :  { %p813_p0 = pnand %p812_p13, %p806_p10 }
  0xaf   :  { %414 = vmatpush1.bf16.msra.mxu0 %v296_v33 }
  0xb0   :  { %415 = vmatprep.subr.bf16.mxu0 %v299_v34 }
  0xb3   :  { %416 = vmatpush1.bf16.msra.mxu0 %v298_v39 }
  0xb4   :  { %417 = vmatprep.subr.bf16.mxu0 %v301_v40 }
  0xb7   :  { %418 = vmatpush1.bf16.msra.mxu0 %v300_v43 }
  0xba   :  { %420 = vmatmul.mubr.bf16.vlgmr.msra.gmra.mrb[0].mxu0 %v96_v48 }
  0xbb   :  { %429 = vmatprep.mubr.bf16.mxu0 %v101_v49 }
  0xc2   :  { %430 = vmatmul.mubr.bf16.gmra.mrb[4].mxu0 %v100_v54 }
  0xc3   :  { %439 = vmatprep.mubr.bf16.mxu0 %v105_v55 }
  0xca   :  { %440 = vmatmul.mubr.bf16.gmra.mrb[8].mxu0 %v104_v60 }
  0xcb   :  { %449 = vmatprep.mubr.bf16.mxu0 %v109_v61 }
  0xd2   :  { %450 = vmatmul.mubr.bf16.gmra.mrb[12].mxu0 %v108_v0 }
 0x18d   :  { %v421_v23 = vpop.f32.mrb[0].mxu0 }
 0x18e   :  { %v699_v24 = vadd.f32 %v421_v23, %v307_v21  ;;  %v423_v25 = vpop.f32.mrb[1].mxu0 }
 0x18f   :  { %v700_v26 = vadd.f32 %v423_v25, %v311_v22  ;;  %v425_v27 = vpop.f32.mrb[2].mxu0 }
 0x190   :  { %v701_v28 = vadd.f32 %v425_v27, %v307_v21  ;;  %v427_v29 = vpop.f32.mrb[3].mxu0  ;;  %v460_v31 = vmax.f32 %v699_v24, 0.0 }
 0x191   :  { %v702_v30 = vadd.f32 %v427_v29, %v311_v22  ;;  %v461_v33 = vmax.f32 %v700_v26, 0.0 }
 0x192   :  { %v462_v32 = vmax.f32 %v701_v28, 0.0 }
 0x193   :  { %v463_v34 = vmax.f32 %v702_v30, 0.0 }
 0x194   :  { %v572_v35 = vpack.c.bf16 %v462_v32, %v460_v31 }
 0x195   :  { %v431_v36 = vpop.f32.mrb[4].mxu0  ;;  %v573_v37 = vpack.c.bf16 %v463_v34, %v461_v33 }
 0x196   :  { %v703_v38 = vadd.f32 %v431_v36, %v307_v21  ;;  %v433_v39 = vpop.f32.mrb[5].mxu0 }
 0x197   :  { %v704_v40 = vadd.f32 %v433_v39, %v311_v22  ;;  %v435_v41 = vpop.f32.mrb[6].mxu0  ;;  %624 = vmatprep.mubr.bf16.mxu1 %v573_v37 }
 0x198   :  { %v705_v42 = vadd.f32 %v435_v41, %v307_v21  ;;  %v437_v43 = vpop.f32.mrb[7].mxu0  ;;  %625 = vmatmul.mubr.bf16.vlgmr.msra.gmra.mrb[0].mxu1 %v572_v35  ;;  %v464_v45 = vmax.f32 %v703_v38, 0.0 }
 0x199   :  { %v706_v44 = vadd.f32 %v437_v43, %v311_v22  ;;  %v465_v47 = vmax.f32 %v704_v40, 0.0 }
 0x19a   :  { %v466_v46 = vmax.f32 %v705_v42, 0.0 }
 0x19b   :  { %v467_v48 = vmax.f32 %v706_v44, 0.0 }
 0x19c   :  { %v574_v49 = vpack.c.bf16 %v466_v46, %v464_v45 }
 0x19d   :  { %v575_v50 = vpack.c.bf16 %v467_v48, %v465_v47  ;;  %v441_v51 = vpop.f32.mrb[8].mxu0 }
 0x19e   :  { %v707_v52 = vadd.f32 %v441_v51, %v307_v21  ;;  %v443_v53 = vpop.f32.mrb[9].mxu0 }
 0x19f   :  { %v708_v54 = vadd.f32 %v443_v53, %v311_v22  ;;  %v445_v55 = vpop.f32.mrb[10].mxu0  ;;  %634 = vmatprep.mubr.bf16.mxu1 %v575_v50 }
 0x1a0   :  { %v709_v56 = vadd.f32 %v445_v55, %v307_v21  ;;  %v447_v57 = vpop.f32.mrb[11].mxu0  ;;  %635 = vmatmul.mubr.bf16.gmra.mrb[4].mxu1 %v574_v49  ;;  %v468_v59 = vmax.f32 %v707_v52, 0.0 }
 0x1a1   :  { %v710_v58 = vadd.f32 %v447_v57, %v311_v22  ;;  %v469_v61 = vmax.f32 %v708_v54, 0.0 }
 0x1a2   :  { %v470_v60 = vmax.f32 %v709_v56, 0.0 }
 0x1a3   :  { %v471_v62 = vmax.f32 %v710_v58, 0.0 }
 0x1a4   :  { %v576_v63 = vpack.c.bf16 %v470_v60, %v468_v59 }
 0x1a5   :  { %v577_v0 = vpack.c.bf16 %v471_v62, %v469_v61  ;;  %v451_v1 = vpop.f32.mrb[12].mxu0 }
 0x1a6   :  { %v711_v2 = vadd.f32 %v451_v1, %v307_v21  ;;  %v453_v3 = vpop.f32.mrb[13].mxu0 }
 0x1a7   :  { %v712_v4 = vadd.f32 %v453_v3, %v311_v22  ;;  %v455_v5 = vpop.f32.mrb[14].mxu0  ;;  %644 = vmatprep.mubr.bf16.mxu1 %v577_v0 }
 0x1a8   :  { %v713_v6 = vadd.f32 %v455_v5, %v307_v21  ;;  %v457_v7 = vpop.f32.mrb[15].mxu0  ;;  %645 = vmatmul.mubr.bf16.gmra.mrb[8].mxu1 %v576_v63  ;;  %v472_v9 = vmax.f32 %v711_v2, 0.0 }
 0x1a9   :  { %v714_v8 = vadd.f32 %v457_v7, %v311_v22  ;;  %v473_v11 = vmax.f32 %v712_v4, 0.0 }
 0x1aa   :  { %v474_v10 = vmax.f32 %v713_v6, 0.0 }
 0x1ab   :  { %v475_v12 = vmax.f32 %v714_v8, 0.0 }
 0x1ac   :  { %v578_v13 = vpack.c.bf16 %v474_v10, %v472_v9 }
 0x1ad   :  { %v579_v14 = vpack.c.bf16 %v475_v12, %v473_v11 }
 0x1af   :  { %654 = vmatprep.mubr.bf16.mxu1 %v579_v14 }
 0x1b0   :  { %655 = vmatmul.mubr.bf16.gmra.mrb[12].mxu1 %v578_v13 }
 0x26b   :  { %v626_v21 = vpop.f32.mrb[0].mxu1 }
 0x26c   :  { %v627_v22 = vadd.f32 %v626_v21, %v585_v16  ;;  %v628_v23 = vpop.f32.mrb[1].mxu1 }
 0x26d   :  { %v629_v24 = vadd.f32 %v628_v23, %v589_v19  ;;  %v630_v25 = vpop.f32.mrb[2].mxu1 }
 0x26e   :  { %665 = vst [vmem:[#allocation8] sm:$0xff] %v627_v22  ;;  %v631_v26 = vadd.f32 %v630_v25, %v585_v16  ;;  %v632_v27 = vpop.f32.mrb[3].mxu1 }
 0x26f   :  { %666 = vst [vmem:[#allocation8 + $0x8] sm:$0xff] %v629_v24  ;;  %v633_v28 = vadd.f32 %v632_v27, %v589_v19 }
 0x270   :  { %667 = vst [vmem:[#allocation8 + $0x10] sm:$0xff] %v631_v26 }
 0x271   :  { %668 = vst [vmem:[#allocation8 + $0x18] sm:$0xff] %v633_v28 }
 0x273   :  { %v636_v29 = vpop.f32.mrb[4].mxu1 }
 0x274   :  { %v637_v30 = vadd.f32 %v636_v29, %v585_v16  ;;  %v638_v31 = vpop.f32.mrb[5].mxu1 }
 0x275   :  { %v639_v32 = vadd.f32 %v638_v31, %v589_v19  ;;  %v640_v18 = vpop.f32.mrb[6].mxu1 }
 0x276   :  { %669 = vst [vmem:[#allocation8 + $0x20] sm:$0xff] %v637_v30  ;;  %v641_v17 = vadd.f32 %v640_v18, %v585_v16  ;;  %v642_v20 = vpop.f32.mrb[7].mxu1 }
 0x277   :  { %670 = vst [vmem:[#allocation8 + $0x28] sm:$0xff] %v639_v32  ;;  %v643_v33 = vadd.f32 %v642_v20, %v589_v19 }
 0x278   :  { %671 = vst [vmem:[#allocation8 + $0x30] sm:$0xff] %v641_v17 }
 0x279   :  { %672 = vst [vmem:[#allocation8 + $0x38] sm:$0xff] %v643_v33 }
 0x27b   :  { %v646_v34 = vpop.f32.mrb[8].mxu1 }
 0x27c   :  { %v647_v35 = vadd.f32 %v646_v34, %v585_v16  ;;  %v648_v36 = vpop.f32.mrb[9].mxu1 }
 0x27d   :  { %v649_v37 = vadd.f32 %v648_v36, %v589_v19  ;;  %v650_v38 = vpop.f32.mrb[10].mxu1 }
 0x27e   :  { %673 = vst [vmem:[#allocation8 + $0x40] sm:$0xff] %v647_v35  ;;  %v651_v39 = vadd.f32 %v650_v38, %v585_v16  ;;  %v652_v40 = vpop.f32.mrb[11].mxu1 }
 0x27f   :  { %674 = vst [vmem:[#allocation8 + $0x48] sm:$0xff] %v649_v37  ;;  %v653_v41 = vadd.f32 %v652_v40, %v589_v19 }
 0x280   :  { %675 = vst [vmem:[#allocation8 + $0x50] sm:$0xff] %v651_v39 }
 0x281   :  { %676 = vst [vmem:[#allocation8 + $0x58] sm:$0xff] %v653_v41 }
 0x283   :  { %v656_v42 = vpop.f32.mrb[12].mxu1 }
 0x284   :  { %v657_v43 = vadd.f32 %v656_v42, %v585_v16  ;;  %v658_v44 = vpop.f32.mrb[13].mxu1 }
 0x285   :  { %v659_v45 = vadd.f32 %v658_v44, %v589_v19  ;;  %v660_v46 = vpop.f32.mrb[14].mxu1 }
 0x286   :  { %677 = vst [vmem:[#allocation8 + $0x60] sm:$0xff] %v657_v43  ;;  %v661_v47 = vadd.f32 %v660_v46, %v585_v16  ;;  %v662_v48 = vpop.f32.mrb[15].mxu1 }
 0x287   :  { %678 = vst [vmem:[#allocation8 + $0x68] sm:$0xff] %v659_v45  ;;  %v663_v49 = vadd.f32 %v662_v48, %v589_v19 }
 0x288   :  { %679 = vst [vmem:[#allocation8 + $0x70] sm:$0xff] %v661_v47 }
 0x289   :  { %680 = vst [vmem:[#allocation8 + $0x78] sm:$0xff] %v663_v49 }
 0x28a   :  { %816 = shalt.err (!%p813_p0)
}
 0x28b   :  { %s817_s14 = scalar_lea.hbm %s951_s5, 2048 }
 0x28c   :  { %p818_p1 = scmp.ne.s32.totalorder %s951_s5, %s817_s14  ;;  %p821_p2 = scmp.lt.u32.totalorder %s817_s14, %s951_s5 }
 0x28e   :  { %p823_p3 = pnand %p821_p2, %p818_p1 }
 0x290   :  { %826 = shalt.err (!%p823_p3)
}
 0x291   :  { %692 = dma.vmem_to_hbm [thread:$0]  %s687_s10, 2048, %s951_s5, [#allocation4], %s834_s28, %s834_s28, %s835_s29  }
 0x292   :  { %831 = dma.done.wait [#allocation4], 2048  }
 0x293   :  { %832 = vsyncadd [#allocation4], 4294965248 }
 0x294   :  { %696 = vsyncpa [#allocation3], 1 }
 0x295   :  { %697 = vsyncpa [#allocation6], 1 }
 0x296   :  { %698 = vsyncpa [#allocation4], 1 }

</bundles_post_ra>
